<compile_context>
chip_gen: v6e
topology: v6e:2x2x1
jax: 0.10.0
libtpu: 0.0.40
codegen_flags: <defaults>
</compile_context>

<pallas_src>
import jax
import jax.numpy as jnp
from jax import lax
from jax.experimental import pallas as pl
from jax.experimental.pallas import tpu as pltpu


def _round_up(x, m):
    return (x + m - 1) // m * m


def _padded_tile_bytes(rows, cols, itemsize):
    # VMEM footprint of a (rows, cols) buffer under (8, 128) native tiling.
    return _round_up(max(rows, 1), 8) * _round_up(max(cols, 1), 128) * itemsize


def _mean_vfe_kernel(feat_ref, sum_mat_ref, cnt_ref, out_ref):
    # feat_ref   : (TN, P*C) lane-dense tile of point features (zero-padded slots)
    # sum_mat_ref: (P*C, C)  constant 0/1 summing matrix (resident across grid)
    # cnt_ref    : (TN, 1)   per-voxel valid-point counts (f32)
    # out_ref    : (TN, C)   per-voxel mean features (f32)
    summed = jnp.dot(
        feat_ref[...],
        sum_mat_ref[...],
        preferred_element_type=jnp.float32,
        precision=lax.Precision.HIGHEST,
    )  # (TN, C) -- the P reduction happens on the MXU
    inv_cnt = pl.reciprocal(jnp.maximum(cnt_ref[...], 1.0), approx=True)  # EUP
    out_ref[...] = (summed * inv_cnt).astype(out_ref.dtype)


def mean_vfe(voxel_features, voxel_num_points, *, tile_n=2048):
    """MeanVFE forward.

    voxel_features: (N, P, C), f32 or bf16, padded point slots must be zero.
    voxel_num_points: (N,) int/float valid-point counts.
    Returns vfe_features: (N, C) float32.
    """
    N, P, C = voxel_features.shape
    feat_dtype = voxel_features.dtype
    if feat_dtype not in (jnp.dtype(jnp.bfloat16), jnp.dtype(jnp.float32)):
        voxel_features = voxel_features.astype(jnp.float32)
        feat_dtype = jnp.dtype(jnp.float32)
    itemsize = jnp.dtype(feat_dtype).itemsize

    # Free lane-dense view; the P axis folds into the lane dimension.
    feat2d = voxel_features.reshape(N, P * C)
    cnt = voxel_num_points.astype(jnp.float32).reshape(N, 1)

    # Tile rows: as large as possible, never (much) bigger than N, multiple of 8,
    # shrunk until the double-buffered working set fits a conservative VMEM budget
    # (safe even on v7x's 64 MiB physical VMEM).
    tile_eff = max(8, min(_round_up(tile_n, 8), _round_up(N, 8)))

    def vmem_bytes(t):
        return (
            2 * _padded_tile_bytes(t, P * C, itemsize)      # feature tile (dbl-buf)
            + 2 * _padded_tile_bytes(t, 1, 4)               # counts
            + 2 * _padded_tile_bytes(t, C, 4)               # output tile
            + 2 * _padded_tile_bytes(P * C, C, itemsize)    # summing matrix
        )

    budget = 24 * 1024 * 1024
    while tile_eff > 8 and vmem_bytes(tile_eff) > budget:
        tile_eff = max(8, _round_up(tile_eff // 2, 8))

    grid = (pl.cdiv(N, tile_eff),)

    # Constant 0/1 summing matrix: row p*C + c has a 1 at column c.
    sum_mat = jnp.tile(jnp.eye(C, dtype=feat_dtype), (P, 1))  # (P*C, C)

    vmem_limit = int(
        min(40 * 1024 * 1024, max(16 * 1024 * 1024, 2 * vmem_bytes(tile_eff)))
    )

    out = pl.pallas_call(
        _mean_vfe_kernel,
        out_shape=jax.ShapeDtypeStruct((N, C), jnp.float32),
        grid_spec=pltpu.PrefetchScalarGridSpec(
            num_scalar_prefetch=0,
            grid=grid,
            in_specs=[
                pl.BlockSpec((tile_eff, P * C), lambda i: (i, 0)),
                pl.BlockSpec((P * C, C), lambda i: (0, 0)),   # resident constant
                pl.BlockSpec((tile_eff, 1), lambda i: (i, 0)),
            ],
            out_specs=pl.BlockSpec((tile_eff, C), lambda i: (i, 0)),
        ),
        compiler_params=pltpu.CompilerParams(
            dimension_semantics=("parallel",),
            vmem_limit_bytes=vmem_limit,
        ),
    )(feat2d, sum_mat, cnt)

    return out


if __name__ == "__main__":
    key = jax.random.PRNGKey(0)
    k_feat, k_cnt = jax.random.split(key)

    # Small shapes consistent with a VFE: 100 voxels (deliberately not a tile
    # multiple to exercise the ragged-N masking path), up to 8 points each,
    # 32-dim point features.
    N, P, C = 100, 8, 32

    num_points = jax.random.randint(k_cnt, (N,), 1, P + 1)  # valid counts in [1, P]
    raw = jax.random.normal(k_feat, (N, P, C), dtype=jnp.float32)
    # Zero out padded point slots (as produced by the voxelizer in OpenPCDet).
    point_mask = (jnp.arange(P)[None, :] < num_points[:, None]).astype(jnp.float32)
    voxel_features = raw * point_mask[:, :, None]

    vfe_features = mean_vfe(voxel_features, num_points)
    jax.block_until_ready(vfe_features)

    # Reference check (plain JAX) against the MeanVFE semantics.
    ref = voxel_features.sum(axis=1) / jnp.clip(
        num_points.astype(jnp.float32), 1.0, None
    )[:, None]
    assert vfe_features.shape == (N, C)
    # Tolerance widened slightly for the approx (EUP) reciprocal (~1e-3 rel).
    assert jnp.allclose(vfe_features, ref, atol=5e-3, rtol=5e-3)

    print("KERNEL_OK")
</pallas_src>

<mosaic_0001>
module attributes {stable_mosaic.version = 11 : i64} {
  func.func @_mean_vfe_kernel(%arg0: i32, %arg1: memref<104x256xf32, #tpu.memory_space<vmem>>, %arg2: memref<256x32xf32, #tpu.memory_space<vmem>>, %arg3: memref<104x1xf32, #tpu.memory_space<vmem>>, %arg4: memref<104x32xf32, #tpu.memory_space<vmem>>) attributes {dimension_semantics = [#tpu.dimension_semantics<parallel>], iteration_bounds = array<i64: 1>, scalar_prefetch = 0 : i64, scratch_operands = 0 : i64, tpu.core_type = #tpu.core_type<tc>, window_params = [{transform_indices = @transform_0, window_bounds = array<i64: 104, 256>}, {pipeline_mode = #tpu.pipeline_mode<synchronous>, transform_indices = @transform_1, window_bounds = array<i64: 256, 32>}, {transform_indices = @transform_2, window_bounds = array<i64: 104, 1>}, {transform_indices = @transform_3, window_bounds = array<i64: 104, 32>}]} {
    %c0 = arith.constant 0 : index
    %c0_0 = arith.constant 0 : index
    %0 = vector.load %arg1[%c0, %c0_0] : memref<104x256xf32, #tpu.memory_space<vmem>>, vector<104x256xf32>
    %c0_1 = arith.constant 0 : index
    %c0_2 = arith.constant 0 : index
    %1 = vector.load %arg2[%c0_1, %c0_2] : memref<256x32xf32, #tpu.memory_space<vmem>>, vector<256x32xf32>
    %cst = arith.constant dense<0.000000e+00> : vector<104x32xf32>
    %2 = tpu.matmul %0, %1, %cst {dimension_numbers = #tpu.dot_dimension_numbers<[1], [0], [0], [1], [0, 0, 1, 1], [], []>, precision = #tpu.contract_precision<fp32>} : vector<104x256xf32>, vector<256x32xf32>, vector<104x32xf32> -> vector<104x32xf32>
    %c0_3 = arith.constant 0 : index
    %c0_4 = arith.constant 0 : index
    %3 = vector.load %arg3[%c0_3, %c0_4] : memref<104x1xf32, #tpu.memory_space<vmem>>, vector<104x1xf32>
    %cst_5 = arith.constant 1.000000e+00 : f32
    %4 = vector.broadcast %cst_5 : f32 to vector<104x1xf32>
    %5 = arith.maximumf %3, %4 : vector<104x1xf32>
    %6 = tpu.reciprocal %5 {approx = true} : vector<104x1xf32> -> vector<104x1xf32>
    %7 = vector.broadcast %6 : vector<104x1xf32> to vector<104x32xf32>
    %8 = arith.mulf %2, %7 : vector<104x32xf32>
    %c0_6 = arith.constant 0 : index
    %c0_7 = arith.constant 0 : index
    %9 = vector.load %arg4[%c0_6, %c0_7] : memref<104x32xf32, #tpu.memory_space<vmem>>, vector<104x32xf32>
    tpu.vector_store %arg4[%c0_6, %c0_7], %8 {strides = array<i32>} : memref<104x32xf32, #tpu.memory_space<vmem>>, vector<104x32xf32>,
    return
  }
  func.func @transform_0(%arg0: i32) -> (i32, i32) {
    %c0_i32 = arith.constant 0 : i32
    %c0_i32_0 = arith.constant 0 : i32
    return %arg0, %c0_i32 : i32, i32
  }
  func.func @transform_1(%arg0: i32) -> (i32, i32) {
    %c0_i32 = arith.constant 0 : i32
    %c0_i32_0 = arith.constant 0 : i32
    %c0_i32_1 = arith.constant 0 : i32
    return %c0_i32, %c0_i32_0 : i32, i32
  }
  func.func @transform_2(%arg0: i32) -> (i32, i32) {
    %c0_i32 = arith.constant 0 : i32
    %c0_i32_0 = arith.constant 0 : i32
    return %arg0, %c0_i32 : i32, i32
  }
  func.func @transform_3(%arg0: i32) -> (i32, i32) {
    %c0_i32 = arith.constant 0 : i32
    %c0_i32_0 = arith.constant 0 : i32
    return %arg0, %c0_i32 : i32, i32
  }
}

</mosaic_0001>

<bundles_post_ra>
// kernel: tpu_custom_call.1
= control target key start
LH: loop header
LB: loop body
LE: loop exit
PB: predicated region body
PF: predicated region fallthrough
CT: control target
= control target key end

     0   :  { %vm1723_vm0 = vcmask 261120   ;;  %s3609_s1 = inlined_call_operand.vmem [shape: f32[256,32], index: 1, kind: input, shape index: {}]   ;;  %s3610_s0 = inlined_call_operand.vmem [shape: f32[100,256], index: 0, kind: input, shape index: {}]   ;;  %s3611_s2 = inlined_call_operand.vmem [shape: f32[100,1], index: 2, kind: input, shape index: {}]   ;;  %s3612_s3 = inlined_call_operand.vmem [shape: f32[100,32], index: 3, kind: output, shape index: {}]  }
   0x1   :  { %v71_v0 = vld [vmem:[%s3609_s1 + $0xf8] sm:$0xff]  ;;  %v70_v2 = vld [vmem:[%s3609_s1 + $0xf0] sm:$0xff]  ;;  %v69_v7 = vld [vmem:[%s3609_s1 + $0xe8] sm:$0xff] }
   0x2   :  { %v55_v1 = vld [vmem:[%s3609_s1 + $0x78] sm:$0xff]  ;;  %v2226_v3 = vand.u32 4294901760, %v71_v0  ;;  %v2230_v5 = vand.u32 4294901760, %v70_v2  ;;  %v54_v6 = vld [vmem:[%s3609_s1 + $0x70] sm:$0xff]  ;;  %v53_v8 = vld [vmem:[%s3609_s1 + $0x68] sm:$0xff]  ;;  %v2243_v10 = vand.u32 4294901760, %v69_v7 }
   0x3   :  { %v2228_v4 = vand.u32 4294901760, %v55_v1  ;;  %v2241_v9 = vand.u32 4294901760, %v54_v6  ;;  %v2245_v11 = vand.u32 4294901760, %v53_v8  ;;  %v68_v12 = vld [vmem:[%s3609_s1 + $0xe0] sm:$0xff]  ;;  %v67_v14 = vld [vmem:[%s3609_s1 + $0xd8] sm:$0xff]  ;;  %v2274_v20 = vld [vmem:[%s3609_s1 + $0xd0] sm:$0xff] }
   0x4   :  { %3798 = vst [vmem:[#allocation2_spill] sm:$0xff] %v2243_v10  ;;  %v52_v13 = vld [vmem:[%s3609_s1 + $0x60] sm:$0xff]  ;;  %1741 = vmatprep.subr.mxu0 %v2226_v3  ;;  %v2257_v15 = vand.u32 4294901760, %v68_v12  ;;  %v2261_v17 = vand.u32 4294901760, %v67_v14  ;;  %v2264_v18 = vsub.f32 %v71_v0, %v2226_v3  ;;  %v2269_v19 = vld [vmem:[%s3609_s1 + $0x58] sm:$0xff]  ;;  %v2279_v21 = vld [vmem:[%s3609_s1 + $0x50] sm:$0xff]  ;;  %v2292_v25 = vsub.f32 %v70_v2, %v2230_v5 }
   0x5   :  { %v2259_v16 = vand.u32 4294901760, %v52_v13  ;;  %1742 = vmatpush3.msra.mxu0 %v2228_v4  ;;  %v2283_v22 = vand.u32 4294901760, %v2269_v19  ;;  %v2286_v23 = vsub.f32 %v55_v1, %v2228_v4  ;;  %v2289_v24 = vand.u32 4294901760, %v2274_v20  ;;  %v2297_v26 = vld [vmem:[%s3609_s1 + $0xc8] sm:$0xff]  ;;  %v2307_v28 = vld [vmem:[%s3609_s1 + $0xc0] sm:$0xff]  ;;  %v2359_v46 = vld [vmem:[%s3609_s1 + $0xb8] sm:$0xff] }
   0x6   :  { %3799 = vst [vmem:[#allocation3_spill] sm:$0xff] %v2264_v18  ;;  %3801 = vst [vmem:[#allocation5_spill] sm:$0xff] %v2292_v25  ;;  %v2302_v27 = vld [vmem:[%s3609_s1 + $0x48] sm:$0xff]  ;;  %1743 = vmatprep.subr.mxu0 %v2230_v5  ;;  %v3626_v29 = vand.u32 4294901760, %v2264_v18  ;;  %v2312_v30 = vand.u32 4294901760, %v2279_v21  ;;  %v2315_v31 = vsub.f32 %v54_v6, %v2241_v9  ;;  %v2318_v32 = vand.u32 4294901760, %v2297_v26 }
   0x7   :  { %3800 = vst [vmem:[#allocation4_spill] sm:$0xff] %v2286_v23  ;;  %1744 = vmatpush3.msra.mxu0 %v2241_v9  ;;  %v3625_v33 = vand.u32 4294901760, %v2286_v23  ;;  %v3623_v34 = vand.u32 4294901760, %v2292_v25  ;;  %v2324_v35 = vsub.f32 %v69_v7, %v2243_v10  ;;  %v2327_v36 = vand.u32 4294901760, %v2302_v27  ;;  %v2332_v37 = vld [vmem:[%s3609_s1 + $0x40] sm:$0xff]  ;;  %v2372_v51 = vld [vmem:[%s3609_s1 + $0x38] sm:$0xff] }
   0x8   :  { %3802 = vst [vmem:[#allocation6_spill] sm:$0xff] %v2315_v31  ;;  %3803 = vst [vmem:[#allocation7_spill] sm:$0xff] %v2318_v32  ;;  %1745 = vmatprep.subr.mxu0 %v2243_v10  ;;  %v480_v38 = vsub.f32 %v2264_v18, %v3626_v29  ;;  %v3622_v39 = vand.u32 4294901760, %v2315_v31  ;;  %v2340_v40 = vsub.f32 %v53_v8, %v2245_v11  ;;  %v2343_v41 = vand.u32 4294901760, %v2307_v28  ;;  %v2382_v56 = vld [vmem:[%s3609_s1 + $0xb0] sm:$0xff]  ;;  %v2412_v2 = vld [vmem:[%s3609_s1 + $0xa8] sm:$0xff] }
   0x9   :  { %3804 = vst [vmem:[#allocation8_spill] sm:$0xff] %v2324_v35  ;;  %1746 = vmatpush3.msra.mxu0 %v2245_v11  ;;  %v368_v42 = vsub.f32 %v2286_v23, %v3625_v33  ;;  %v487_v43 = vsub.f32 %v2292_v25, %v3623_v34  ;;  %v3620_v44 = vand.u32 4294901760, %v2324_v35  ;;  %v2354_v45 = vsub.f32 %v68_v12, %v2257_v15  ;;  %v2397_v61 = vld [vmem:[%s3609_s1 + $0x30] sm:$0xff]  ;;  %v2548_v33 = vld [vmem:[%s3609_s1 + $0x88] sm:$0xff] }
   0xa   :  { %3805 = vst [vmem:[#allocation9_spill] sm:$0xff] %v2340_v40  ;;  %3806 = vst [vmem:[#allocation10_spill] sm:$0xff] %v2343_v41  ;;  %1747 = vmatprep.subr.mxu0 %v2257_v15  ;;  %v481_v47 = vand.u32 4294901760, %v480_v38  ;;  %v375_v48 = vsub.f32 %v2315_v31, %v3622_v39  ;;  %v3618_v49 = vand.u32 4294901760, %v2340_v40  ;;  %v2367_v50 = vand.u32 4294901760, %v2332_v37 }
   0xb   :  { %3807 = vst [vmem:[#allocation11_spill] sm:$0xff] %v2354_v45  ;;  %1748 = vmatpush3.msra.mxu0 %v2259_v16  ;;  %v369_v52 = vand.u32 4294901760, %v368_v42  ;;  %v488_v53 = vand.u32 4294901760, %v487_v43  ;;  %v494_v54 = vsub.f32 %v2324_v35, %v3620_v44  ;;  %v3617_v55 = vand.u32 4294901760, %v2354_v45  ;;  %v2521_v44 = vld [vmem:[%s3609_s1 + $0x90] sm:$0xff] }
   0xc   :  { %3808 = vst [vmem:[#allocation12_spill] sm:$0xff] %v2367_v50  ;;  %1749 = vmatprep.subr.mxu0 %v2261_v17  ;;  %1812 = vmatprep.subr.mxu1 %v481_v47  ;;  %v376_v57 = vand.u32 4294901760, %v375_v48  ;;  %v382_v58 = vsub.f32 %v2340_v40, %v3618_v49  ;;  %v2389_v59 = vsub.f32 %v52_v13, %v2259_v16  ;;  %v2392_v60 = vand.u32 4294901760, %v2359_v46  ;;  %v2426_v13 = vld [vmem:[%s3609_s1 + $0x28] sm:$0xff]  ;;  %v2505_v49 = vld [vmem:[%s3609_s1 + $0x18] sm:$0xff] }
   0xd   :  { %1750 = vmatpush3.msra.mxu0 %v2283_v22  ;;  %1813 = vmatpush3.msra.mxu1 %v369_v52  ;;  %v495_v62 = vand.u32 4294901760, %v494_v54  ;;  %v501_v63 = vsub.f32 %v2354_v45, %v3617_v55  ;;  %v2404_v0 = vsub.f32 %v67_v14, %v2261_v17  ;;  %v2407_v1 = vand.u32 4294901760, %v2372_v51 }
   0xe   :  { %3809 = vst [vmem:[#allocation13_spill] sm:$0xff] %v2389_v59  ;;  %3810 = vst [vmem:[#allocation14_spill] sm:$0xff] %v2392_v60  ;;  %1751 = vmatprep.subr.mxu0 %v2289_v24  ;;  %1814 = vmatprep.subr.mxu1 %v488_v53  ;;  %v383_v6 = vand.u32 4294901760, %v382_v58  ;;  %v3615_v7 = vand.u32 4294901760, %v2389_v59  ;;  %v2418_v8 = vsub.f32 %v2269_v19, %v2283_v22  ;;  %v2421_v12 = vand.u32 4294901760, %v2382_v56 }
   0xf   :  { %3811 = vst [vmem:[#allocation15_spill] sm:$0xff] %v2404_v0  ;;  %3812 = vst [vmem:[#allocation16_spill] sm:$0xff] %v2407_v1  ;;  %1752 = vmatpush3.msra.mxu0 %v2312_v30  ;;  %1815 = vmatpush3.msra.mxu1 %v376_v57  ;;  %v502_v14 = vand.u32 4294901760, %v501_v63  ;;  %v3613_v38 = vand.u32 4294901760, %v2404_v0  ;;  %v2432_v42 = vsub.f32 %v2274_v20, %v2289_v24  ;;  %v2435_v19 = vand.u32 4294901760, %v2397_v61  ;;  %v2452_v20 = vld [vmem:[%s3609_s1 + $0xa0] sm:$0xff] }
  0x10   :  { %3813 = vst [vmem:[#allocation17_spill] sm:$0xff] %v2418_v8  ;;  %3814 = vst [vmem:[#allocation18_spill] sm:$0xff] %v2421_v12  ;;  %1753 = vmatprep.subr.mxu0 %v2318_v32  ;;  %1816 = vmatprep.subr.mxu1 %v495_v62  ;;  %v389_v43 = vsub.f32 %v2389_v59, %v3615_v7  ;;  %v3614_v47 = vand.u32 4294901760, %v2418_v8  ;;  %v2444_v48 = vsub.f32 %v2279_v21, %v2312_v30 }
  0x11   :  { %3815 = vst [vmem:[#allocation19_spill] sm:$0xff] %v2432_v42  ;;  %3816 = vst [vmem:[#allocation20_spill] sm:$0xff] %v2435_v19  ;;  %v2447_v52 = vand.u32 4294901760, %v2412_v2  ;;  %1754 = vmatpush3.msra.mxu0 %v2327_v36  ;;  %1817 = vmatpush3.msra.mxu1 %v383_v6  ;;  %v508_v53 = vsub.f32 %v2404_v0, %v3613_v38  ;;  %v3616_v54 = vand.u32 4294901760, %v2432_v42  ;;  %v2464_v57 = vand.u32 4294901760, %v2426_v13 }
  0x12   :  { %v2461_v21 = vsub.f32 %v2297_v26, %v2318_v32  ;;  %1755 = vmatprep.subr.mxu0 %v2343_v41  ;;  %1818 = vmatprep.subr.mxu1 %v502_v14  ;;  %v390_v58 = vand.u32 4294901760, %v389_v43  ;;  %v396_v62 = vsub.f32 %v2418_v8, %v3614_v47  ;;  %v3619_v63 = vand.u32 4294901760, %v2444_v48  ;;  %v2478_v26 = vld [vmem:[%s3609_s1 + $0x20] sm:$0xff] }
  0x13   :  { %3817 = vst [vmem:[#allocation21_spill] sm:$0xff] %v2447_v52  ;;  %3818 = vst [vmem:[#allocation22_spill] sm:$0xff] %v2464_v57  ;;  %v2473_v6 = vsub.f32 %v2302_v27, %v2327_v36  ;;  %1756 = vmatpush3.msra.mxu0 %v2367_v50  ;;  %v509_v38 = vand.u32 4294901760, %v508_v53  ;;  %v515_v14 = vsub.f32 %v2432_v42, %v3616_v54  ;;  %v2486_v47 = vand.u32 4294901760, %v2452_v20  ;;  %v2491_v27 = vld [vmem:[%s3609_s1 + $0x98] sm:$0xff] }
  0x14   :  { %v3621_v43 = vand.u32 4294901760, %v2461_v21  ;;  %1819 = vmatpush3.msra.mxu1 %v390_v58  ;;  %1757 = vmatprep.subr.mxu0 %v2392_v60  ;;  %v397_v7 = vand.u32 4294901760, %v396_v62  ;;  %v403_v53 = vsub.f32 %v2444_v48, %v3619_v63  ;;  %v2500_v55 = vsub.f32 %v2307_v28, %v2343_v41 }
  0x15   :  { %3819 = vst [vmem:[#allocation23_spill] sm:$0xff] %v2486_v47  ;;  %v3624_v54 = vand.u32 4294901760, %v2473_v6  ;;  %1820 = vmatprep.subr.mxu1 %v509_v38  ;;  %1758 = vmatpush3.msra.mxu0 %v2407_v1  ;;  %v516_v58 = vand.u32 4294901760, %v515_v14  ;;  %v2512_v63 = vand.u32 4294901760, %v2478_v26  ;;  %v2516_v28 = vsub.f32 %v2332_v37, %v2367_v50  ;;  %v2534_v37 = vld [vmem:[%s3609_s1 + $0x10] sm:$0xff] }
  0x16   :  { %v522_v62 = vsub.f32 %v2461_v21, %v3621_v43  ;;  %1821 = vmatpush3.msra.mxu1 %v397_v7  ;;  %1759 = vmatprep.subr.mxu0 %v2421_v12  ;;  %v404_v38 = vand.u32 4294901760, %v403_v53  ;;  %v3629_v43 = vand.u32 4294901760, %v2500_v55  ;;  %v2529_v39 = vand.u32 4294901760, %v2491_v27 }
  0x17   :  { %3820 = vst [vmem:[#allocation24_spill] sm:$0xff] %v2512_v63  ;;  %v410_v14 = vsub.f32 %v2473_v6, %v3624_v54  ;;  %1822 = vmatprep.subr.mxu1 %v516_v58  ;;  %1760 = vmatpush3.msra.mxu0 %v2435_v19  ;;  %v3630_v53 = vand.u32 4294901760, %v2516_v28  ;;  %v2540_v34 = vsub.f32 %v2359_v46, %v2392_v60  ;;  %v2543_v54 = vand.u32 4294901760, %v2505_v49 }
  0x18   :  { %3821 = vst [vmem:[#allocation25_spill] sm:$0xff] %v2529_v39  ;;  %v523_v7 = vand.u32 4294901760, %v522_v62  ;;  %1823 = vmatpush3.msra.mxu1 %v404_v38  ;;  %1761 = vmatprep.subr.mxu0 %v2447_v52  ;;  %v529_v62 = vsub.f32 %v2500_v55, %v3629_v43  ;;  %v2556_v46 = vsub.f32 %v2372_v51, %v2407_v1  ;;  %v2559_v29 = vand.u32 4294901760, %v2521_v44  ;;  %v2576_v51 = vld [vmem:[%s3609_s1 + $0x8] sm:$0xff] }
  0x19   :  { %3822 = vst [vmem:[#allocation26_spill] sm:$0xff] %v2540_v34  ;;  %3823 = vst [vmem:[#allocation27_spill] sm:$0xff] %v2543_v54  ;;  %v411_v58 = vand.u32 4294901760, %v410_v14  ;;  %1762 = vmatpush3.msra.mxu0 %v2464_v57  ;;  %v417_v38 = vsub.f32 %v2516_v28, %v3630_v53  ;;  %v2568_v60 = vsub.f32 %v2382_v56, %v2421_v12  ;;  %v2571_v43 = vand.u32 4294901760, %v2534_v37  ;;  %v2590_v12 = vld [vmem:[%s3609_s1 + $0x80] sm:$0xff] }
  0x1a   :  { %3824 = vst [vmem:[#allocation28_spill] sm:$0xff] %v2556_v46  ;;  %3825 = vst [vmem:[#allocation29_spill] sm:$0xff] %v2559_v29  ;;  %1824 = vmatprep.subr.mxu1 %v523_v7  ;;  %1763 = vmatprep.subr.mxu0 %v2486_v47  ;;  %v530_v7 = vand.u32 4294901760, %v529_v62  ;;  %v2582_v14 = vsub.f32 %v2397_v61, %v2435_v19  ;;  %v2585_v56 = vand.u32 4294901760, %v2548_v33  ;;  %v3829_v1 = vand.u32 4294901760, %v2540_v34 }
  0x1b   :  { %3826 = vst [vmem:[#allocation30_spill] sm:$0xff] %v2568_v60  ;;  %1825 = vmatpush3.msra.mxu1 %v411_v58  ;;  %1764 = vmatpush3.msra.mxu0 %v2512_v63  ;;  %v418_v58 = vand.u32 4294901760, %v417_v38  ;;  %v3649_v53 = vand.u32 4294901760, %v2568_v60  ;;  %v2599_v61 = vsub.f32 %v2412_v2, %v2447_v52  ;;  %v3831_v19 = vand.u32 4294901760, %v2556_v46  ;;  %v2616_v2 = vld [vmem:[%s3609_s1] sm:$0xff] }
  0x1c   :  { %3827 = vst [vmem:[#allocation31_spill] sm:$0xff] %v2582_v14  ;;  %3828 = vst [vmem:[#allocation32_spill] sm:$0xff] %v2585_v56  ;;  %v536_v62 = vsub.f32 %v2540_v34, %v3829_v1  ;;  %1826 = vmatprep.subr.mxu1 %v530_v7  ;;  %1765 = vmatprep.subr.mxu0 %v2529_v39  ;;  %v2607_v38 = vand.u32 4294901760, %v2576_v51  ;;  %v2611_v1 = vsub.f32 %v2426_v13, %v2464_v57  ;;  %v15_v7 = vld [vmem:[%s3610_s0 + $0x8] sm:$0xff] }
  0x1d   :  { %3830 = vst [vmem:[#allocation33_spill] sm:$0xff] %v2599_v61  ;;  %v424_v50 = vsub.f32 %v2556_v46, %v3831_v19  ;;  %1827 = vmatpush3.msra.mxu1 %v418_v58  ;;  %1766 = vmatpush3.msra.mxu0 %v2543_v54  ;;  %v543_v41 = vsub.f32 %v2568_v60, %v3649_v53  ;;  %v2627_v57 = vand.u32 4294901760, %v2590_v12  ;;  %v3834_v46 = vand.u32 4294901760, %v2582_v14  ;;  %v14_v53 = vld [vmem:[%s3610_s0] sm:$0xff] }
  0x1e   :  { %3832 = vst [vmem:[#allocation34_spill] sm:$0xff] %v2607_v38  ;;  %v537_v19 = vand.u32 4294901760, %v536_v62  ;;  %1767 = vmatprep.subr.mxu0 %v2559_v29  ;;  %v2636_v62 = vsub.f32 %v2452_v20, %v2486_v47  ;;  %v2648_v58 = vand.u32 4294901760, %v15_v7  ;;  %v3838_v47 = vand.u32 4294901760, %v2611_v1 }
  0x1f   :  { %3833 = vst [vmem:[#allocation35_spill] sm:$0xff] %v2627_v57  ;;  %v425_v52 = vand.u32 4294901760, %v424_v50  ;;  %v431_v34 = vsub.f32 %v2582_v14, %v3834_v46  ;;  %v544_v13 = vand.u32 4294901760, %v543_v41  ;;  %1768 = vmatpush3.msra.mxu0 %v2571_v43  ;;  %v3835_v50 = vand.u32 4294901760, %v2599_v61 }
  0x20   :  { %1828 = vmatprep.subr.mxu1 %v537_v19  ;;  %v2646_v46 = vand.u32 4294901760, %v2616_v2  ;;  %3837 = vst [vmem:[#allocation37_spill] sm:$0xff] %v2648_v58  ;;  %1769 = vmatprep.subr.mxu0 %v2585_v56  ;;  %v438_v19 = vsub.f32 %v2611_v1, %v3838_v47  ;;  %v3660_v41 = vand.u32 4294901760, %v2636_v62  ;;  %v2657_v14 = vsub.f32 %v2478_v26, %v2512_v63  ;;  %v17_v47 = vld [vmem:[%s3610_s0 + $0x18] sm:$0xff] }
  0x21   :  { %v550_v60 = vsub.f32 %v2599_v61, %v3835_v50  ;;  %1829 = vmatpush3.msra.mxu1 %v425_v52  ;;  %v432_v20 = vand.u32 4294901760, %v431_v34  ;;  %1770 = vmatpush3.msra.mxu0 %v2607_v38  ;;  %v2661_v61 = vsub.f32 %v15_v7, %v2648_v58  ;;  %v2663_v34 = vand.u32 4294901760, %v14_v53 }
  0x22   :  { %3836 = vst [vmem:[#allocation36_spill] sm:$0xff] %v2646_v46  ;;  %1830 = vmatprep.subr.mxu1 %v544_v13  ;;  %v2667_v52 = vsub.f32 %v2491_v27, %v2529_v39  ;;  %v439_v26 = vand.u32 4294901760, %v438_v19  ;;  %1771 = vmatprep.subr.mxu0 %v2627_v57  ;;  %v3663_v7 = vand.u32 4294901760, %v2657_v14  ;;  %v2679_v13 = vsub.f32 %v2505_v49, %v2543_v54 }
  0x23   :  { %v551_v50 = vand.u32 4294901760, %v550_v60  ;;  %3839 = vst [vmem:[#allocation38_spill] sm:$0xff] %v2661_v61  ;;  %3840 = vst [vmem:[#allocation39_spill] sm:$0xff] %v2663_v34  ;;  %1831 = vmatpush3.msra.mxu1 %v432_v20  ;;  %v557_v60 = vsub.f32 %v2636_v62, %v3660_v41  ;;  %1772 = vmatpush3.msra.mxu0 %v2646_v46  ;;  %v3665_v27 = vand.u32 4294901760, %v2661_v61  ;;  %v2695_v54 = vand.u32 4294901760, %v17_v47 }
  0x24   :  { %3841 = vst [vmem:[#allocation40_spill] sm:$0xff] %v2679_v13  ;;  %v2684_v20 = vsub.f32 %v14_v53, %v2663_v34  ;;  %v2689_v39 = vsub.f32 %v2521_v44, %v2559_v29  ;;  %v445_v49 = vsub.f32 %v2657_v14, %v3663_v7  ;;  %1883 = vmatprep.subr.mxu0 %v2264_v18  ;;  %v3843_v44 = vand.u32 4294901760, %v2667_v52  ;;  %v16_v7 = vld [vmem:[%s3610_s0 + $0x10] sm:$0xff] }
  0x25   :  { %1832 = vmatprep.subr.mxu1 %v551_v50  ;;  %v558_v41 = vand.u32 4294901760, %v557_v60  ;;  %3842 = vst [vmem:[#allocation41_spill] sm:$0xff] %v2695_v54  ;;  %v171_v53 = vsub.f32 %v2661_v61, %v3665_v27  ;;  %589 = vmatprep.mubr.f32.mxu1 %v2648_v58  ;;  %v3844_v18 = vand.u32 4294901760, %v2679_v13  ;;  %v2714_v19 = vsub.f32 %v17_v47, %v2695_v54 }
  0x26   :  { %1833 = vmatpush3.msra.mxu1 %v439_v26  ;;  %v564_v26 = vsub.f32 %v2667_v52, %v3843_v44  ;;  %v446_v50 = vand.u32 4294901760, %v445_v49  ;;  %v2718_v44 = vsub.f32 %v2534_v37, %v2571_v43  ;;  %v3846_v29 = vand.u32 4294901760, %v2684_v20  ;;  %v19_v37 = vld [vmem:[%s3610_s0 + $0x28] sm:$0xff] }
  0x27   :  { %1834 = vmatprep.subr.mxu1 %v558_v41  ;;  %v452_v27 = vsub.f32 %v2679_v13, %v3844_v18  ;;  %3845 = vst [vmem:[#allocation42_spill] sm:$0xff] %v2714_v19  ;;  %v172_v60 = vand.u32 4294901760, %v171_v53  ;;  %v3847_v41 = vand.u32 4294901760, %v2689_v39  ;;  %v3677_v18 = vand.u32 4294901760, %v2714_v19 }
  0x28   :  { %v177_v61 = vsub.f32 %v2684_v20, %v3846_v29  ;;  %v565_v63 = vand.u32 4294901760, %v564_v26  ;;  %1835 = vmatpush3.msra.mxu1 %v446_v50  ;;  %v3676_v47 = vand.u32 4294901760, %v2718_v44  ;;  %v2728_v13 = vand.u32 4294901760, %v16_v7 }
  0x29   :  { %v571_v49 = vsub.f32 %v2689_v39, %v3847_v41  ;;  %v453_v58 = vand.u32 4294901760, %v452_v27  ;;  %173 = vmatprep.mubr.f32.mxu0 %v172_v60  ;;  %v2735_v26 = vsub.f32 %v2548_v33, %v2585_v56  ;;  %v2739_v27 = vsub.f32 %v2576_v51, %v2607_v38 }
  0x2a   :  { %3848 = vst [vmem:[#allocation43_spill] sm:$0xff] %v2728_v13  ;;  %v178_v53 = vand.u32 4294901760, %v177_v61  ;;  %1836 = vmatprep.subr.mxu1 %v565_v63  ;;  %v186_v50 = vsub.f32 %v2714_v19, %v3677_v18  ;;  %v459_v60 = vsub.f32 %v2718_v44, %v3676_v47  ;;  %v2748_v63 = vsub.f32 %v16_v7, %v2728_v13  ;;  %v18_v7 = vld [vmem:[%s3610_s0 + $0x20] sm:$0xff] }
  0x2b   :  { %v572_v29 = vand.u32 4294901760, %v571_v49  ;;  %1837 = vmatpush3.msra.mxu1 %v453_v58  ;;  %v2752_v33 = vsub.f32 %v2590_v12, %v2627_v57  ;;  %v3680_v51 = vand.u32 4294901760, %v2735_v26  ;;  %v3682_v61 = vand.u32 4294901760, %v2739_v27  ;;  %v21_v12 = vld [vmem:[%s3610_s0 + $0x38] sm:$0xff]  ;;  %v22_v57 = vld [vmem:[%s3610_s0 + $0x40] sm:$0xff] }
  0x2c   :  { %3849 = vst [vmem:[#allocation44_spill] sm:$0xff] %v2748_v63  ;;  %179 = vmatmul.mubr.f32.vlgmr.msra.gmra.mxu0 %v178_v53  ;;  %v2756_v58 = vand.u32 4294901760, %v19_v37  ;;  %v2760_v41 = vsub.f32 %v2616_v2, %v2646_v46  ;;  %v187_v49 = vand.u32 4294901760, %v186_v50  ;;  %v460_v53 = vand.u32 4294901760, %v459_v60 }
  0x2d   :  { %1838 = vmatprep.subr.mxu1 %v572_v29  ;;  %v3683_v29 = vand.u32 4294901760, %v2748_v63  ;;  %v3685_v47 = vand.u32 4294901760, %v2752_v33  ;;  %1884 = vmatpush3.msra.mxu0 %v2286_v23  ;;  %v578_v2 = vsub.f32 %v2735_v26, %v3680_v51  ;;  %v466_v18 = vsub.f32 %v2739_v27, %v3682_v61 }
  0x2e   :  { %3850 = vst [vmem:[#allocation45_spill] sm:$0xff] %v2756_v58  ;;  %v2778_v46 = vsub.f32 %v19_v37, %v2756_v58  ;;  %1885 = vmatprep.subr.mxu0 %v2292_v25  ;;  %188 = vmatprep.mubr.f32.mxu0 %v187_v49  ;;  %v2788_v23 = vand.u32 4294901760, %v18_v7  ;;  %v2790_v61 = vand.u32 4294901760, %v21_v12  ;;  %v20_v37 = vld [vmem:[%s3610_s0 + $0x30] sm:$0xff]  ;;  %v23_v49 = vld [vmem:[%s3610_s0 + $0x48] sm:$0xff]  ;;  %v3854_v25 = vand.u32 4294901760, %v2760_v41 }
  0x2f   :  { %1839 = vmatpush3.msra.mxu1 %v460_v53  ;;  %v192_v60 = vsub.f32 %v2748_v63, %v3683_v29  ;;  %v585_v51 = vsub.f32 %v2752_v33, %v3685_v47  ;;  %v579_v53 = vand.u32 4294901760, %v578_v2  ;;  %v467_v50 = vand.u32 4294901760, %v466_v18  ;;  %1886 = vmatpush3.msra.mxu0 %v2315_v31  ;;  %v25_v63 = vld [vmem:[%s3610_s0 + $0x58] sm:$0xff] }
  0x30   :  { %3851 = vst [vmem:[#allocation46_spill] sm:$0xff] %v2778_v46  ;;  %3852 = vst [vmem:[#allocation47_spill] sm:$0xff] %v2788_v23  ;;  %v3698_v29 = vand.u32 4294901760, %v2778_v46  ;;  %v473_v47 = vsub.f32 %v2760_v41, %v3854_v25  ;;  %v2810_v18 = vsub.f32 %v18_v7, %v2788_v23  ;;  %v2813_v2 = vsub.f32 %v21_v12, %v2790_v61  ;;  %v24_v25 = vld [vmem:[%s3610_s0 + $0x50] sm:$0xff]  ;;  %v27_v7 = vld [vmem:[%s3610_s0 + $0x68] sm:$0xff] }
  0x31   :  { %3853 = vst [vmem:[#allocation48_spill] sm:$0xff] %v2790_v61  ;;  %v193_v38 = vand.u32 4294901760, %v192_v60  ;;  %v586_v19 = vand.u32 4294901760, %v585_v51  ;;  %1887 = vmatprep.subr.mxu0 %v2324_v35  ;;  %1840 = vmatprep.subr.mxu1 %v579_v53  ;;  %v2822_v60 = vand.u32 4294901760, %v20_v37  ;;  %v2825_v51 = vand.u32 4294901760, %v23_v49 }
  0x32   :  { %3855 = vst [vmem:[#allocation49_spill] sm:$0xff] %v2813_v2  ;;  %v201_v31 = vsub.f32 %v2778_v46, %v3698_v29  ;;  %v474_v56 = vand.u32 4294901760, %v473_v47  ;;  %1888 = vmatpush3.msra.mxu0 %v2340_v40  ;;  %1841 = vmatpush3.msra.mxu1 %v467_v50  ;;  %v3702_v12 = vand.u32 4294901760, %v2810_v18  ;;  %v3704_v53 = vand.u32 4294901760, %v2813_v2 }
  0x33   :  { %3856 = vst [vmem:[#allocation50_spill] sm:$0xff] %v2822_v60  ;;  %3857 = vst [vmem:[#allocation51_spill] sm:$0xff] %v2825_v51  ;;  %194 = vmatmul.mubr.f32.gmra.mxu0 %v193_v38  ;;  %v2832_v35 = vand.u32 4294901760, %v22_v57  ;;  %v2834_v29 = vand.u32 4294901760, %v25_v63  ;;  %1842 = vmatprep.subr.mxu1 %v586_v19  ;;  %v2837_v40 = vsub.f32 %v20_v37, %v2822_v60  ;;  %v2843_v38 = vand.u32 4294901760, %v24_v25 }
  0x34   :  { %v202_v47 = vand.u32 4294901760, %v201_v31  ;;  %v2840_v46 = vsub.f32 %v23_v49, %v2825_v51  ;;  %1889 = vmatprep.subr.mxu0 %v2354_v45  ;;  %1843 = vmatpush3.msra.mxu1 %v474_v56  ;;  %v207_v50 = vsub.f32 %v2810_v18, %v3702_v12  ;;  %v216_v19 = vsub.f32 %v2813_v2, %v3704_v53 }
  0x35   :  { %3858 = vst [vmem:[#allocation52_spill] sm:$0xff] %v2832_v35  ;;  %3859 = vst [vmem:[#allocation53_spill] sm:$0xff] %v2834_v29  ;;  %v2852_v31 = vsub.f32 %v22_v57, %v2832_v35  ;;  %1890 = vmatpush3.msra.mxu0 %v2389_v59  ;;  %v2855_v37 = vand.u32 4294901760, %v27_v7  ;;  %591 = vmatmul.mubr.f32.vlgmr.msra.gmra.mxu1 %v2663_v34  ;;  %v2861_v12 = vsub.f32 %v25_v63, %v2834_v29  ;;  %v26_v57 = vld [vmem:[%s3610_s0 + $0x60] sm:$0xff] }
  0x36   :  { %3860 = vst [vmem:[#allocation54_spill] sm:$0xff] %v2837_v40  ;;  %3861 = vst [vmem:[#allocation55_spill] sm:$0xff] %v2840_v46  ;;  %203 = vmatprep.mubr.f32.mxu0 %v202_v47  ;;  %v2864_v45 = vsub.f32 %v24_v25, %v2843_v38  ;;  %v29_v47 = vld [vmem:[%s3610_s0 + $0x78] sm:$0xff]  ;;  %v208_v53 = vand.u32 4294901760, %v207_v50  ;;  %1954 = vmatprep.subr.mxu1 %v2226_v3  ;;  %v217_v56 = vand.u32 4294901760, %v216_v19  ;;  %v3868_v25 = vand.u32 4294901760, %v2837_v40 }
  0x37   :  { %3862 = vst [vmem:[#allocation56_spill] sm:$0xff] %v2843_v38  ;;  %3863 = vst [vmem:[#allocation57_spill] sm:$0xff] %v2852_v31  ;;  %596 = vmatprep.mubr.f32.mxu1 %v2695_v54  ;;  %v3714_v63 = vand.u32 4294901760, %v2852_v31  ;;  %v2876_v49 = vsub.f32 %v27_v7, %v2855_v37  ;;  %1955 = vmatpush3.msra.mxu1 %v2228_v4  ;;  %v3869_v59 = vand.u32 4294901760, %v2840_v46 }
  0x38   :  { %3864 = vst [vmem:[#allocation58_spill] sm:$0xff] %v2855_v37  ;;  %3865 = vst [vmem:[#allocation59_spill] sm:$0xff] %v2861_v12  ;;  %v222_v34 = vsub.f32 %v2837_v40, %v3868_v25  ;;  %1891 = vmatprep.subr.mxu0 %v2404_v0  ;;  %209 = vmatmul.mubr.f32.gmra.mxu0 %v208_v53  ;;  %v2893_v25 = vand.u32 4294901760, %v26_v57  ;;  %v2895_v40 = vand.u32 4294901760, %v29_v47  ;;  %v31_v53 = vld [vmem:[%s3610_s0 + $0x88] sm:$0xff]  ;;  %v30_v0 = vld [vmem:[%s3610_s0 + $0x80] sm:$0xff] }
  0x39   :  { %3866 = vst [vmem:[#allocation60_spill] sm:$0xff] %v2864_v45  ;;  %3867 = vst [vmem:[#allocation61_spill] sm:$0xff] %v2876_v49  ;;  %v231_v50 = vsub.f32 %v2840_v46, %v3869_v59  ;;  %1956 = vmatprep.subr.mxu1 %v2230_v5  ;;  %v237_v7 = vsub.f32 %v2852_v31, %v3714_v63  ;;  %v28_v59 = vld [vmem:[%s3610_s0 + $0x70] sm:$0xff]  ;;  %218 = vmatprep.mubr.f32.mxu0 %v217_v56  ;;  %v3872_v63 = vand.u32 4294901760, %v2861_v12  ;;  %v33_v56 = vld [vmem:[%s3610_s0 + $0x98] sm:$0xff] }
  0x3a   :  { %3870 = vst [vmem:[#allocation62_spill] sm:$0xff] %v2893_v25  ;;  %3871 = vst [vmem:[#allocation63_spill] sm:$0xff] %v2895_v40  ;;  %v223_v19 = vand.u32 4294901760, %v222_v34  ;;  %598 = vmatmul.mubr.f32.gmra.mxu1 %v2728_v13  ;;  %v2913_v31 = vsub.f32 %v26_v57, %v2893_v25  ;;  %v2916_v34 = vsub.f32 %v29_v47, %v2895_v40  ;;  %1892 = vmatpush3.msra.mxu0 %v2418_v8 }
  0x3b   :  { %v232_v2 = vand.u32 4294901760, %v231_v50  ;;  %v246_v54 = vsub.f32 %v2861_v12, %v3872_v63  ;;  %1957 = vmatpush3.msra.mxu1 %v2241_v9  ;;  %603 = vmatprep.mubr.f32.mxu1 %v2756_v58  ;;  %v238_v63 = vand.u32 4294901760, %v237_v7  ;;  %v3874_v50 = vand.u32 4294901760, %v2864_v45  ;;  %v35_v7 = vld [vmem:[%s3610_s0 + $0xa8] sm:$0xff] }
  0x3c   :  { %3873 = vst [vmem:[#allocation64_spill] sm:$0xff] %v2916_v34  ;;  %1958 = vmatprep.subr.mxu1 %v2243_v10  ;;  %v2926_v58 = vand.u32 4294901760, %v28_v59  ;;  %v2928_v57 = vand.u32 4294901760, %v31_v53  ;;  %224 = vmatmul.mubr.f32.gmra.mxu0 %v223_v19  ;;  %v3877_v12 = vand.u32 4294901760, %v2876_v49  ;;  %v2935_v10 = vand.u32 4294901760, %v30_v0 }
  0x3d   :  { %v252_v13 = vsub.f32 %v2864_v45, %v3874_v50  ;;  %1959 = vmatpush3.msra.mxu1 %v2245_v11  ;;  %v247_v47 = vand.u32 4294901760, %v246_v54  ;;  %v32_v50 = vld [vmem:[%s3610_s0 + $0x90] sm:$0xff]  ;;  %233 = vmatprep.mubr.f32.mxu0 %v232_v2  ;;  %v3884_v19 = vand.u32 4294901760, %v2913_v31 }
  0x3e   :  { %3875 = vst [vmem:[#allocation65_spill] sm:$0xff] %v2926_v58  ;;  %3876 = vst [vmem:[#allocation66_spill] sm:$0xff] %v2928_v57  ;;  %v261_v46 = vsub.f32 %v2876_v49, %v3877_v12  ;;  %605 = vmatmul.mubr.f32.gmra.mxu1 %v2788_v23  ;;  %v2943_v8 = vsub.f32 %v28_v59, %v2926_v58  ;;  %v2946_v54 = vsub.f32 %v31_v53, %v2928_v57 }
  0x3f   :  { %3878 = vst [vmem:[#allocation67_spill] sm:$0xff] %v2935_v10  ;;  %v2948_v12 = vand.u32 4294901760, %v33_v56  ;;  %1960 = vmatprep.subr.mxu1 %v2257_v15  ;;  %610 = vmatprep.mubr.f32.mxu1 %v2790_v61  ;;  %v2958_v2 = vsub.f32 %v30_v0, %v2935_v10  ;;  %v2960_v59 = vand.u32 4294901760, %v32_v50  ;;  %v253_v53 = vand.u32 4294901760, %v252_v13 }
  0x40   :  { %3879 = vst [vmem:[#allocation68_spill] sm:$0xff] %v2943_v8  ;;  %3880 = vst [vmem:[#allocation69_spill] sm:$0xff] %v2946_v54  ;;  %1961 = vmatpush3.msra.mxu1 %v2259_v16  ;;  %1893 = vmatprep.subr.mxu0 %v2432_v42  ;;  %v267_v23 = vsub.f32 %v2913_v31, %v3884_v19  ;;  %v3743_v49 = vand.u32 4294901760, %v2943_v8  ;;  %v2967_v61 = vand.u32 4294901760, %v35_v7  ;;  %v262_v42 = vand.u32 4294901760, %v261_v46  ;;  %v34_v19 = vld [vmem:[%s3610_s0 + $0xa0] sm:$0xff] }
  0x41   :  { %3881 = vst [vmem:[#allocation70_spill] sm:$0xff] %v2948_v12  ;;  %3882 = vst [vmem:[#allocation71_spill] sm:$0xff] %v2958_v2  ;;  %239 = vmatmul.mubr.f32.gmra.mxu0 %v238_v63  ;;  %1962 = vmatprep.subr.mxu1 %v2261_v17  ;;  %v3886_v0 = vand.u32 4294901760, %v2916_v34  ;;  %v2975_v63 = vsub.f32 %v33_v56, %v2948_v12  ;;  %v37_v46 = vld [vmem:[%s3610_s0 + $0xb8] sm:$0xff]  ;;  %v2989_v56 = vsub.f32 %v32_v50, %v2960_v59 }
  0x42   :  { %3883 = vst [vmem:[#allocation72_spill] sm:$0xff] %v2960_v59  ;;  %3885 = vst [vmem:[#allocation73_spill] sm:$0xff] %v2967_v61  ;;  %248 = vmatprep.mubr.f32.mxu0 %v247_v47  ;;  %612 = vmatmul.mubr.f32.gmra.mxu1 %v2822_v60  ;;  %v282_v13 = vsub.f32 %v2943_v8, %v3743_v49  ;;  %v2998_v60 = vand.u32 4294901760, %v34_v19  ;;  %v3891_v50 = vand.u32 4294901760, %v2946_v54  ;;  %v36_v49 = vld [vmem:[%s3610_s0 + $0xb0] sm:$0xff] }
  0x43   :  { %v276_v45 = vsub.f32 %v2916_v34, %v3886_v0  ;;  %3887 = vst [vmem:[#allocation74_spill] sm:$0xff] %v2975_v63  ;;  %1963 = vmatpush3.msra.mxu1 %v2283_v22  ;;  %617 = vmatprep.mubr.f32.mxu1 %v2825_v51  ;;  %3888 = vst [vmem:[#allocation75_spill] sm:$0xff] %v2989_v56  ;;  %v268_v0 = vand.u32 4294901760, %v267_v23  ;;  %v2996_v51 = vsub.f32 %v35_v7, %v2967_v61 }
  0x44   :  { %1894 = vmatpush3.msra.mxu0 %v2444_v48  ;;  %1964 = vmatprep.subr.mxu1 %v2289_v24  ;;  %3890 = vst [vmem:[#allocation77_spill] sm:$0xff] %v2998_v60  ;;  %v3005_v34 = vand.u32 4294901760, %v37_v46  ;;  %v283_v23 = vand.u32 4294901760, %v282_v13  ;;  %v3896_v8 = vand.u32 4294901760, %v2975_v63 }
  0x45   :  { %254 = vmatmul.mubr.f32.gmra.mxu0 %v253_v53  ;;  %1895 = vmatprep.subr.mxu0 %v2461_v21  ;;  %3889 = vst [vmem:[#allocation76_spill] sm:$0xff] %v2996_v51  ;;  %v277_v47 = vand.u32 4294901760, %v276_v45  ;;  %v291_v53 = vsub.f32 %v2946_v54, %v3891_v50  ;;  %v39_v45 = vld [vmem:[%s3610_s0 + $0xc8] sm:$0xff]  ;;  %v3761_v50 = vand.u32 4294901760, %v2989_v56  ;;  %v3026_v54 = vand.u32 4294901760, %v36_v49 }
  0x46   :  { %263 = vmatprep.mubr.f32.mxu0 %v262_v42  ;;  %619 = vmatmul.mubr.f32.gmra.mxu1 %v2832_v35  ;;  %3892 = vst [vmem:[#allocation78_spill] sm:$0xff] %v3005_v34  ;;  %v3893_v42 = vand.u32 4294901760, %v2958_v2  ;;  %v3024_v35 = vsub.f32 %v34_v19, %v2998_v60  ;;  %v3035_v13 = vand.u32 4294901760, %v39_v45  ;;  %v38_v19 = vld [vmem:[%s3610_s0 + $0xc0] sm:$0xff] }
  0x47   :  { %1965 = vmatpush3.msra.mxu1 %v2312_v30  ;;  %624 = vmatprep.mubr.f32.mxu1 %v2834_v29  ;;  %3895 = vst [vmem:[#allocation80_spill] sm:$0xff] %v3026_v54  ;;  %v3904_v29 = vld [vmem:[#allocation28_spill] sm:$0xff] }
  0x48   :  { %1896 = vmatpush3.msra.mxu0 %v2473_v6  ;;  %1966 = vmatprep.subr.mxu1 %v2318_v32  ;;  %v297_v7 = vsub.f32 %v2958_v2, %v3893_v42  ;;  %3894 = vst [vmem:[#allocation79_spill] sm:$0xff] %v3024_v35  ;;  %v292_v32 = vand.u32 4294901760, %v291_v53  ;;  %v306_v42 = vsub.f32 %v2975_v63, %v3896_v8  ;;  %3898 = vst [vmem:[#allocation82_spill] sm:$0xff] %v3035_v13  ;;  %v3900_v53 = vld [vmem:[#allocation26_spill] sm:$0xff] }
  0x49   :  { %269 = vmatmul.mubr.f32.gmra.mxu0 %v268_v0  ;;  %1897 = vmatprep.subr.mxu0 %v2500_v55  ;;  %v3033_v0 = vsub.f32 %v37_v46, %v3005_v34  ;;  %v312_v8 = vsub.f32 %v2989_v56, %v3761_v50  ;;  %v3052_v63 = vand.u32 4294901760, %v38_v19  ;;  %v3902_v2 = vand.u32 4294901760, %v2996_v51  ;;  %v3903_v50 = vld [vmem:[#allocation12_spill] sm:$0xff] }
  0x4a   :  { %278 = vmatprep.mubr.f32.mxu0 %v277_v47  ;;  %626 = vmatmul.mubr.f32.gmra.mxu1 %v2843_v38  ;;  %v3899_v47 = vld [vmem:[#allocation10_spill] sm:$0xff]  ;;  %v298_v46 = vand.u32 4294901760, %v297_v7  ;;  %v3050_v38 = vsub.f32 %v36_v49, %v3026_v54  ;;  %v3060_v7 = vsub.f32 %v39_v45, %v3035_v13 }
  0x4b   :  { %3897 = vst [vmem:[#allocation81_spill] sm:$0xff] %v3033_v0  ;;  %1967 = vmatpush3.msra.mxu1 %v2327_v36  ;;  %1898 = vmatpush3.msra.mxu0 %v2516_v28  ;;  %3901 = vst [vmem:[#allocation26_spill] sm:$0xff] %v3052_v63  ;;  %v3905_v49 = vld [vmem:[#allocation14_spill] sm:$0xff]  ;;  %v3072_v45 = vsub.f32 %v38_v19, %v3052_v63  ;;  %v3908_v56 = vand.u32 4294901760, %v3033_v0  ;;  %v3912_v19 = vld [vmem:[#allocation33_spill] sm:$0xff] }
  0x4c   :  { %631 = vmatprep.mubr.f32.mxu1 %v2855_v37  ;;  %1968 = vmatprep.subr.mxu1 %v3899_v47  ;;  %v307_v37 = vand.u32 4294901760, %v306_v42  ;;  %v321_v47 = vsub.f32 %v2996_v51, %v3902_v2  ;;  %v313_v42 = vand.u32 4294901760, %v312_v8  ;;  %v3909_v8 = vld [vmem:[#allocation30_spill] sm:$0xff] }
  0x4d   :  { %284 = vmatmul.mubr.f32.gmra.mxu0 %v283_v23  ;;  %1899 = vmatprep.subr.mxu0 %v3900_v53  ;;  %v3776_v23 = vand.u32 4294901760, %v3050_v38 }
  0x4e   :  { %293 = vmatprep.mubr.f32.mxu0 %v292_v32  ;;  %633 = vmatmul.mubr.f32.gmra.mxu1 %v2893_v25  ;;  %v3906_v32 = vld [vmem:[#allocation16_spill] sm:$0xff]  ;;  %v3907_v25 = vand.u32 4294901760, %v3024_v35  ;;  %v322_v51 = vand.u32 4294901760, %v321_v47 }
  0x4f   :  { %1969 = vmatpush3.msra.mxu1 %v3903_v50  ;;  %1900 = vmatpush3.msra.mxu0 %v3904_v29  ;;  %v342_v47 = vsub.f32 %v3050_v38, %v3776_v23 }
  0x50   :  { %1970 = vmatprep.subr.mxu1 %v3905_v49  ;;  %638 = vmatprep.mubr.f32.mxu1 %v2895_v40  ;;  %v327_v2 = vsub.f32 %v3024_v35, %v3907_v25  ;;  %v3911_v25 = vld [vmem:[#allocation31_spill] sm:$0xff]  ;;  %v3913_v40 = vld [vmem:[#allocation20_spill] sm:$0xff] }
  0x51   :  { %299 = vmatmul.mubr.f32.gmra.mxu0 %v298_v46  ;;  %1971 = vmatpush3.msra.mxu1 %v3906_v32  ;;  %v336_v46 = vsub.f32 %v3033_v0, %v3908_v56  ;;  %v3910_v32 = vld [vmem:[#allocation18_spill] sm:$0xff]  ;;  %v3779_v56 = vand.u32 4294901760, %v3072_v45  ;;  %v3914_v0 = vand.u32 4294901760, %v3060_v7  ;;  %v343_v23 = vand.u32 4294901760, %v342_v47 }
  0x52   :  { %308 = vmatprep.mubr.f32.mxu0 %v307_v37  ;;  %640 = vmatmul.mubr.f32.gmra.mxu1 %v2926_v58  ;;  %v328_v37 = vand.u32 4294901760, %v327_v2  ;;  %v3916_v2 = vld [vmem:[#allocation22_spill] sm:$0xff] }
  0x53   :  { %1901 = vmatprep.subr.mxu0 %v3909_v8  ;;  %1972 = vmatprep.subr.mxu1 %v3910_v32  ;;  %v337_v58 = vand.u32 4294901760, %v336_v46  ;;  %v351_v35 = vsub.f32 %v3060_v7, %v3914_v0  ;;  %v3917_v46 = vld [vmem:[#allocation23_spill] sm:$0xff] }
  0x54   :  { %1902 = vmatpush3.msra.mxu0 %v3911_v25  ;;  %645 = vmatprep.mubr.f32.mxu1 %v2928_v57  ;;  %v3934_v57 = vld [vmem:[#allocation4_spill] sm:$0xff] }
  0x55   :  { %314 = vmatmul.mubr.f32.gmra.mxu0 %v313_v42  ;;  %1903 = vmatprep.subr.mxu0 %v3912_v19  ;;  %v3915_v42 = vld [vmem:[#allocation21_spill] sm:$0xff]  ;;  %v352_v0 = vand.u32 4294901760, %v351_v35 }
  0x56   :  { %323 = vmatprep.mubr.f32.mxu0 %v322_v51  ;;  %1973 = vmatpush3.msra.mxu1 %v3913_v40  ;;  %v357_v51 = vsub.f32 %v3072_v45, %v3779_v56  ;;  %v3920_v35 = vld [vmem:[#allocation25_spill] sm:$0xff]  ;;  %v3926_v56 = vld [vmem:[#allocation34_spill] sm:$0xff] }
  0x57   :  { %647 = vmatmul.mubr.f32.gmra.mxu1 %v2935_v10  ;;  %1904 = vmatpush3.msra.mxu0 %v2611_v1  ;;  %v3919_v10 = vld [vmem:[#allocation40_spill] sm:$0xff] }
  0x58   :  { %1974 = vmatprep.subr.mxu1 %v3915_v42  ;;  %1905 = vmatprep.subr.mxu0 %v2636_v62  ;;  %v358_v47 = vand.u32 4294901760, %v357_v51  ;;  %v3923_v51 = vld [vmem:[#allocation29_spill] sm:$0xff] }
  0x59   :  { %329 = vmatmul.mubr.f32.gmra.mxu0 %v328_v37  ;;  %1975 = vmatpush3.msra.mxu1 %v3916_v2  ;;  %v3918_v37 = vld [vmem:[#allocation24_spill] sm:$0xff] }
  0x5a   :  { %338 = vmatprep.mubr.f32.mxu0 %v337_v58  ;;  %652 = vmatprep.mubr.f32.mxu1 %v2948_v12  ;;  %v3921_v58 = vld [vmem:[#allocation27_spill] sm:$0xff]  ;;  %v3932_v12 = vld [vmem:[#allocation36_spill] sm:$0xff] }
  0x5b   :  { %1906 = vmatpush3.msra.mxu0 %v2657_v14  ;;  %654 = vmatmul.mubr.f32.gmra.mxu1 %v2960_v59  ;;  %v3931_v59 = vld [vmem:[#allocation46_spill] sm:$0xff] }
  0x5c   :  { %1907 = vmatprep.subr.mxu0 %v2667_v52  ;;  %1976 = vmatprep.subr.mxu1 %v3917_v46 }
  0x5d   :  { %344 = vmatmul.mubr.f32.gmra.mxu0 %v343_v23  ;;  %1977 = vmatpush3.msra.mxu1 %v3918_v37  ;;  %v3922_v23 = vld [vmem:[#allocation38_spill] sm:$0xff] }
  0x5e   :  { %1908 = vmatpush3.msra.mxu0 %v3919_v10  ;;  %353 = vmatprep.mubr.f32.mxu0 %v352_v0  ;;  %v3924_v0 = vld [vmem:[#allocation32_spill] sm:$0xff] }
  0x5f   :  { %1909 = vmatprep.subr.mxu0 %v2689_v39  ;;  %659 = vmatprep.mubr.f32.mxu1 %v2967_v61  ;;  %v3929_v61 = vld [vmem:[#allocation44_spill] sm:$0xff] }
  0x60   :  { %1910 = vmatpush3.msra.mxu0 %v2718_v44  ;;  %1978 = vmatprep.subr.mxu1 %v3920_v35 }
  0x61   :  { %359 = vmatmul.mubr.f32.gmra.mxu0 %v358_v47  ;;  %661 = vmatmul.mubr.f32.gmra.mxu1 %v2998_v60  ;;  %v3925_v47 = vld [vmem:[#allocation42_spill] sm:$0xff] }
  0x62   :  { %1911 = vmatprep.subr.mxu0 %v2735_v26  ;;  %1979 = vmatpush3.msra.mxu1 %v3921_v58 }
  0x63   :  { %1912 = vmatpush3.msra.mxu0 %v2739_v27  ;;  %666 = vmatprep.mubr.f32.mxu1 %v3005_v34  ;;  %v3927_v34 = vld [vmem:[#allocation3_spill] sm:$0xff] }
  0x64   :  { %1913 = vmatprep.subr.mxu0 %v2752_v33  ;;  %810 = vmatprep.mubr.f32.mxu0 %v3922_v23  ;;  %v3928_v60 = vand.u32 4294901760, %v3927_v34  ;;  %v3937_v34 = vld [vmem:[#allocation5_spill] sm:$0xff] }
  0x65   :  { %1914 = vmatpush3.msra.mxu0 %v2760_v41  ;;  %1980 = vmatprep.subr.mxu1 %v3923_v51 }
  0x66   :  { %668 = vmatmul.mubr.f32.gmra.mxu1 %v3026_v54  ;;  %813 = vmatmul.mubr.f32.vlgmr.msra.gmra.mxu0 %v2684_v20  ;;  %v3930_v54 = vld [vmem:[#allocation35_spill] sm:$0xff] }
  0x67   :  { %1981 = vmatpush3.msra.mxu1 %v2571_v43  ;;  %673 = vmatprep.mubr.f32.mxu1 %v3035_v13  ;;  %v3933_v13 = vand.u32 4294901760, %v3922_v23  ;;  %v3940_v23 = vand.u32 4294901760, %v3925_v47 }
  0x68   :  { %1982 = vmatprep.subr.mxu1 %v3924_v0  ;;  %819 = vmatprep.mubr.f32.mxu0 %v3925_v47  ;;  %v3935_v0 = vand.u32 4294901760, %v3934_v57  ;;  %v3949_v47 = vld [vmem:[#allocation55_spill] sm:$0xff] }
  0x69   :  { %1983 = vmatpush3.msra.mxu1 %v3926_v56  ;;  %2025 = vmatprep.subr.mxu0 %v3928_v60  ;;  %v3936_v60 = vand.u32 4294901760, %v2684_v20  ;;  %v3944_v20 = vand.u32 4294901760, %v3929_v61 }
  0x6a   :  { %675 = vmatmul.mubr.f32.gmra.mxu1 %v3052_v63  ;;  %822 = vmatmul.mubr.f32.gmra.mxu0 %v3929_v61  ;;  %v3938_v63 = vand.u32 4294901760, %v3937_v34  ;;  %v3950_v34 = vand.u32 4294901760, %v3931_v59  ;;  %v3953_v61 = vand.u32 4294901760, %v2810_v18 }
  0x6b   :  { %1984 = vmatprep.subr.mxu1 %v3930_v54  ;;  %828 = vmatprep.mubr.f32.mxu0 %v3931_v59  ;;  %v3939_v54 = vld [vmem:[#allocation49_spill] sm:$0xff] }
  0x6c   :  { %1985 = vmatpush3.msra.mxu1 %v3932_v12  ;;  %1025 = vmatprep.mubr.f32.mxu1 %v3933_v13  ;;  %v3941_v13 = vld [vmem:[#allocation6_spill] sm:$0xff]  ;;  %v3959_v59 = vand.u32 4294901760, %v3939_v54 }
  0x6d   :  { %2026 = vmatpush3.msra.mxu0 %v3935_v0  ;;  %2096 = vmatprep.subr.mxu1 %v2226_v3  ;;  %v3942_v57 = vand.u32 4294901760, %v3941_v13  ;;  %v3943_v3 = vld [vmem:[#allocation54_spill] sm:$0xff]  ;;  %v3945_v0 = vld [vmem:[#allocation8_spill] sm:$0xff]  ;;  %v3954_v13 = vld [vmem:[#allocation11_spill] sm:$0xff] }
  0x6e   :  { %831 = vmatmul.mubr.f32.gmra.mxu0 %v2810_v18  ;;  %1029 = vmatmul.mubr.f32.vlgmr.msra.gmra.mxu1 %v3936_v60  ;;  %v3962_v18 = vld [vmem:[#allocation60_spill] sm:$0xff] }
  0x6f   :  { %2097 = vmatpush3.msra.mxu1 %v2228_v4  ;;  %2027 = vmatprep.subr.mxu0 %v3938_v63  ;;  %v3946_v4 = vand.u32 4294901760, %v3945_v0  ;;  %v3947_v63 = vld [vmem:[#allocation9_spill] sm:$0xff]  ;;  %v3958_v0 = vld [vmem:[#allocation59_spill] sm:$0xff] }
  0x70   :  { %837 = vmatprep.mubr.f32.mxu0 %v3939_v54  ;;  %1036 = vmatprep.mubr.f32.mxu1 %v3940_v23  ;;  %v3948_v60 = vand.u32 4294901760, %v3947_v63  ;;  %v3951_v23 = vld [vmem:[#allocation2_spill] sm:$0xff]  ;;  %v3967_v54 = vand.u32 4294901760, %v3949_v47 }
  0x71   :  { %2028 = vmatpush3.msra.mxu0 %v3942_v57  ;;  %2098 = vmatprep.subr.mxu1 %v2230_v5  ;;  %v3952_v5 = vld [vmem:[#allocation57_spill] sm:$0xff]  ;;  %v3955_v57 = vand.u32 4294901760, %v3954_v13  ;;  %v3975_v13 = vand.u32 4294901760, %v2473_v6 }
  0x72   :  { %840 = vmatmul.mubr.f32.gmra.mxu0 %v3943_v3  ;;  %1040 = vmatmul.mubr.f32.gmra.mxu1 %v3944_v20 }
  0x73   :  { %2029 = vmatprep.subr.mxu0 %v3946_v4  ;;  %2099 = vmatpush3.msra.mxu1 %v2241_v9  ;;  %v3956_v9 = vld [vmem:[#allocation13_spill] sm:$0xff]  ;;  %v3960_v4 = vld [vmem:[#allocation15_spill] sm:$0xff] }
  0x74   :  { %2030 = vmatpush3.msra.mxu0 %v3948_v60  ;;  %846 = vmatprep.mubr.f32.mxu0 %v3949_v47  ;;  %v3957_v20 = vand.u32 4294901760, %v3956_v9  ;;  %v3961_v63 = vand.u32 4294901760, %v3960_v4  ;;  %v3963_v60 = vand.u32 4294901760, %v3943_v3  ;;  %v3971_v3 = vand.u32 4294901760, %v2444_v48  ;;  %v3977_v48 = vld [vmem:[#allocation68_spill] sm:$0xff]  ;;  %v3983_v9 = vld [vmem:[#allocation10_spill] sm:$0xff] }
  0x75   :  { %1047 = vmatprep.mubr.f32.mxu1 %v3950_v34  ;;  %2100 = vmatprep.subr.mxu1 %v3951_v23  ;;  %v3968_v23 = vld [vmem:[#allocation19_spill] sm:$0xff]  ;;  %v3974_v47 = vand.u32 4294901760, %v3958_v0  ;;  %v3990_v4 = vld [vmem:[#allocation16_spill] sm:$0xff] }
  0x76   :  { %849 = vmatmul.mubr.f32.gmra.mxu0 %v3952_v5  ;;  %1051 = vmatmul.mubr.f32.gmra.mxu1 %v3953_v61  ;;  %v3969_v61 = vand.u32 4294901760, %v3968_v23  ;;  %v4007_v23 = vand.u32 4294901760, %v3919_v10 }
  0x77   :  { %2031 = vmatprep.subr.mxu0 %v3955_v57  ;;  %2101 = vmatpush3.msra.mxu1 %v2245_v11  ;;  %v3964_v11 = vld [vmem:[#allocation17_spill] sm:$0xff]  ;;  %v3978_v57 = vld [vmem:[#allocation7_spill] sm:$0xff] }
  0x78   :  { %2032 = vmatpush3.msra.mxu0 %v3957_v20  ;;  %2102 = vmatprep.subr.mxu1 %v2257_v15  ;;  %v3965_v34 = vand.u32 4294901760, %v3964_v11  ;;  %v3966_v15 = vld [vmem:[#allocation61_spill] sm:$0xff]  ;;  %v3984_v20 = vld [vmem:[#allocation71_spill] sm:$0xff]  ;;  %v4001_v11 = vand.u32 4294901760, %v2636_v62 }
  0x79   :  { %855 = vmatprep.mubr.f32.mxu0 %v3958_v0  ;;  %1058 = vmatprep.mubr.f32.mxu1 %v3959_v59  ;;  %v3982_v6 = vand.u32 4294901760, %v3966_v15  ;;  %v3985_v0 = vand.u32 4294901760, %v2913_v31 }
  0x7a   :  { %2033 = vmatprep.subr.mxu0 %v3961_v63  ;;  %2103 = vmatpush3.msra.mxu1 %v2259_v16  ;;  %v3970_v16 = vand.u32 4294901760, %v3952_v5  ;;  %v3976_v5 = vand.u32 4294901760, %v3962_v18  ;;  %v3991_v63 = vld [vmem:[#allocation75_spill] sm:$0xff] }
  0x7b   :  { %858 = vmatmul.mubr.f32.gmra.mxu0 %v3962_v18  ;;  %1062 = vmatmul.mubr.f32.gmra.mxu1 %v3963_v60  ;;  %v3997_v18 = vand.u32 4294901760, %v3912_v19  ;;  %v3998_v60 = vld [vmem:[#allocation79_spill] sm:$0xff]  ;;  %v1608_v19 = vld [vmem:[%s3611_s2 + $0x10] sm:$0xff]  ;;  %v4005_v62 = vand.u32 4294901760, %v3991_v63 }
  0x7c   :  { %2034 = vmatpush3.msra.mxu0 %v3965_v34  ;;  %2104 = vmatprep.subr.mxu1 %v2261_v17  ;;  %v3972_v17 = vand.u32 4294901760, %v2461_v21  ;;  %v3981_v21 = vld [vmem:[#allocation69_spill] sm:$0xff] }
  0x7d   :  { %2105 = vmatpush3.msra.mxu1 %v2283_v22  ;;  %864 = vmatprep.mubr.f32.mxu0 %v3966_v15  ;;  %v3973_v22 = vld [vmem:[#allocation64_spill] sm:$0xff]  ;;  %v4002_v34 = vld [vmem:[#allocation81_spill] sm:$0xff] }
  0x7e   :  { %1069 = vmatprep.mubr.f32.mxu1 %v3967_v54  ;;  %2035 = vmatprep.subr.mxu0 %v3969_v61  ;;  %v3989_v59 = vand.u32 4294901760, %v3973_v22  ;;  %v1621_v54 = vmax.f32 %v1608_v19, 1.0 }
  0x7f   :  { %867 = vmatmul.mubr.f32.gmra.mxu0 %v2913_v31  ;;  %1073 = vmatmul.mubr.f32.gmra.mxu1 %v3970_v16  ;;  %v3992_v31 = vand.u32 4294901760, %v3977_v48  ;;  %v4008_v16 = vand.u32 4294901760, %v2689_v39  ;;  %v4011_v39 = vand.u32 4294901760, %v3998_v60 }
  0x80   :  { %2036 = vmatpush3.msra.mxu0 %v3971_v3  ;;  %2106 = vmatprep.subr.mxu1 %v2289_v24  ;;  %v3979_v24 = vand.u32 4294901760, %v2500_v55  ;;  %v3986_v55 = vand.u32 4294901760, %v3900_v53  ;;  %v3993_v53 = vand.u32 4294901760, %v3909_v8  ;;  %v1606_v8 = vld [vmem:[%s3611_s2] sm:$0xff] }
  0x81   :  { %2037 = vmatprep.subr.mxu0 %v3972_v17  ;;  %2107 = vmatpush3.msra.mxu1 %v2312_v30  ;;  %v3980_v30 = vand.u32 4294901760, %v2516_v28  ;;  %v3988_v28 = vld [vmem:[#allocation74_spill] sm:$0xff]  ;;  %v1611_v17 = vld [vmem:[%s3611_s2 + $0x28] sm:$0xff] }
  0x82   :  { %873 = vmatprep.mubr.f32.mxu0 %v3973_v22  ;;  %1080 = vmatprep.mubr.f32.mxu1 %v3974_v47  ;;  %v4003_v15 = vand.u32 4294901760, %v3988_v28  ;;  %v4012_v22 = vand.u32 4294901760, %v2735_v26  ;;  %v4014_v47 = vand.u32 4294901760, %v4002_v34  ;;  %v1624_v26 = vmax.f32 %v1611_v17, 1.0  ;;  %v4046_v17 = vld [vmem:[#allocation82_spill] sm:$0xff] }
  0x83   :  { %2038 = vmatpush3.msra.mxu0 %v3975_v13  ;;  %1084 = vmatmul.mubr.f32.gmra.mxu1 %v3976_v5  ;;  %v4015_v13 = vand.u32 4294901760, %v2752_v33  ;;  %v4016_v5 = vld [vmem:[#allocation37_spill] sm:$0xff]  ;;  %v4019_v33 = vld [vmem:[#allocation39_spill] sm:$0xff] }
  0x84   :  { %876 = vmatmul.mubr.f32.gmra.mxu0 %v3977_v48  ;;  %2108 = vmatprep.subr.mxu1 %v3978_v57  ;;  %v4017_v48 = vand.u32 4294901760, %v2760_v41  ;;  %v4018_v57 = vand.u32 4294901760, %v3050_v38  ;;  %v4020_v41 = vand.u32 4294901760, %v3060_v7 }
  0x85   :  { %2039 = vmatprep.subr.mxu0 %v3979_v24  ;;  %2109 = vmatpush3.msra.mxu1 %v2327_v36  ;;  %v3987_v36 = vand.u32 4294901760, %v3904_v29  ;;  %v3994_v29 = vand.u32 4294901760, %v3911_v25  ;;  %v3999_v25 = vand.u32 4294901760, %v3984_v20  ;;  %v1614_v24 = vld [vmem:[%s3611_s2 + $0x40] sm:$0xff] }
  0x86   :  { %2040 = vmatpush3.msra.mxu0 %v3980_v30  ;;  %882 = vmatprep.mubr.f32.mxu0 %v3981_v21  ;;  %v4022_v30 = vld [vmem:[#allocation41_spill] sm:$0xff] }
  0x87   :  { %1091 = vmatprep.mubr.f32.mxu1 %v3982_v6  ;;  %2110 = vmatprep.subr.mxu1 %v3983_v9  ;;  %v1627_v6 = vmax.f32 %v1614_v24, 1.0  ;;  %v1615_v9 = vld [vmem:[%s3611_s2 + $0x48] sm:$0xff] }
  0x88   :  { %885 = vmatmul.mubr.f32.gmra.mxu0 %v3984_v20  ;;  %1095 = vmatmul.mubr.f32.gmra.mxu1 %v3985_v0  ;;  %v4024_v20 = vld [vmem:[#allocation43_spill] sm:$0xff]  ;;  %v1616_v0 = vld [vmem:[%s3611_s2 + $0x50] sm:$0xff] }
  0x89   :  { %2041 = vmatprep.subr.mxu0 %v3986_v55  ;;  %2111 = vmatpush3.msra.mxu1 %v3903_v50  ;;  %v3995_v50 = vld [vmem:[#allocation76_spill] sm:$0xff]  ;;  %v4025_v55 = vld [vmem:[#allocation35_spill] sm:$0xff] }
  0x8a   :  { %2042 = vmatpush3.msra.mxu0 %v3987_v36  ;;  %2112 = vmatprep.subr.mxu1 %v3905_v49  ;;  %v3996_v49 = vand.u32 4294901760, %v3981_v21  ;;  %v4009_v10 = vand.u32 4294901760, %v3995_v50  ;;  %v1628_v36 = vmax.f32 %v1615_v9, 1.0 }
  0x8b   :  { %891 = vmatprep.mubr.f32.mxu0 %v3988_v28  ;;  %1102 = vmatprep.mubr.f32.mxu1 %v3989_v59  ;;  %v1617_v59 = vld [vmem:[%s3611_s2 + $0x58] sm:$0xff] }
  0x8c   :  { %2113 = vmatpush3.msra.mxu1 %v3990_v4  ;;  %894 = vmatmul.mubr.f32.gmra.mxu0 %v3991_v63  ;;  %v4027_v63 = vld [vmem:[#allocation47_spill] sm:$0xff] }
  0x8d   :  { %1106 = vmatmul.mubr.f32.gmra.mxu1 %v3992_v31  ;;  %2043 = vmatprep.subr.mxu0 %v3993_v53  ;;  %v4028_v31 = vld [vmem:[#allocation48_spill] sm:$0xff]  ;;  %v1630_v53 = vmax.f32 %v1617_v59, 1.0 }
  0x8e   :  { %2044 = vmatpush3.msra.mxu0 %v3994_v29  ;;  %2114 = vmatprep.subr.mxu1 %v3910_v32  ;;  %v4000_v32 = vand.u32 4294901760, %v2611_v1  ;;  %v1607_v1 = vld [vmem:[%s3611_s2 + $0x8] sm:$0xff] }
  0x8f   :  { %900 = vmatprep.mubr.f32.mxu0 %v3995_v50  ;;  %1113 = vmatprep.mubr.f32.mxu1 %v3996_v49  ;;  %v1620_v61 = vmax.f32 %v1607_v1, 1.0 }
  0x90   :  { %2045 = vmatprep.subr.mxu0 %v3997_v18  ;;  %2115 = vmatpush3.msra.mxu1 %v3913_v40  ;;  %v1619_v40 = vmax.f32 %v1606_v8, 1.0  ;;  %v4029_v18 = vld [vmem:[#allocation50_spill] sm:$0xff]  ;;  %v4030_v8 = vld [vmem:[#allocation51_spill] sm:$0xff] }
  0x91   :  { %903 = vmatmul.mubr.f32.gmra.mxu0 %v3998_v60  ;;  %1117 = vmatmul.mubr.f32.gmra.mxu1 %v3999_v25 }
  0x92   :  { %2046 = vmatpush3.msra.mxu0 %v4000_v32  ;;  %2116 = vmatprep.subr.mxu1 %v3915_v42  ;;  %v4004_v42 = vand.u32 4294901760, %v2657_v14  ;;  %2170 = vrcp.f32 %v1619_v40  ;;  %v1609_v14 = vld [vmem:[%s3611_s2 + $0x18] sm:$0xff]  ;;  %v4031_v32 = vld [vmem:[#allocation52_spill] sm:$0xff] }
  0x93   :  { %2047 = vmatprep.subr.mxu0 %v4001_v11  ;;  %2117 = vmatpush3.msra.mxu1 %v3916_v2  ;;  %v4006_v2 = vand.u32 4294901760, %v2667_v52  ;;  %v1610_v52 = vld [vmem:[%s3611_s2 + $0x20] sm:$0xff]  ;;  %2172 = vrcp.f32 %v1621_v54  ;;  %v1622_v3 = vmax.f32 %v1609_v14, 1.0  ;;  %v4032_v11 = vld [vmem:[#allocation53_spill] sm:$0xff] }
  0x94   :  { %909 = vmatprep.mubr.f32.mxu0 %v4002_v34  ;;  %1124 = vmatprep.mubr.f32.mxu1 %v4003_v15  ;;  %2174 = vrcp.f32 %v1620_v61  ;;  %v4033_v34 = vld [vmem:[#allocation56_spill] sm:$0xff]  ;;  %v4034_v15 = vld [vmem:[#allocation58_spill] sm:$0xff]  ;;  %v4037_v61 = vld [vmem:[#allocation65_spill] sm:$0xff] }
  0x95   :  { %2048 = vmatpush3.msra.mxu0 %v4004_v42  ;;  %1128 = vmatmul.mubr.f32.gmra.mxu1 %v4005_v62  ;;  %2176 = vrcp.f32 %v1622_v3  ;;  %v4035_v62 = vld [vmem:[#allocation62_spill] sm:$0xff]  ;;  %v4043_v3 = vld [vmem:[#allocation77_spill] sm:$0xff] }
  0x96   :  { %912 = vmatmul.mubr.f32.gmra.mxu0 %v3050_v38  ;;  %2049 = vmatprep.subr.mxu0 %v4006_v2  ;;  %v2196_v38 = vmov 0   ;;  %v4036_v2 = vld [vmem:[#allocation63_spill] sm:$0xff]  ;;  %v4038_v14 = vld [vmem:[#allocation66_spill] sm:$0xff] }
  0x97   :  { %2118 = vmatprep.subr.mxu1 %v3917_v46  ;;  %2050 = vmatpush3.msra.mxu0 %v4007_v23  ;;  %v4010_v46 = vand.u32 4294901760, %v2718_v44  ;;  %v1612_v44 = vld [vmem:[%s3611_s2 + $0x30] sm:$0xff] }
  0x98   :  { %2119 = vmatpush3.msra.mxu1 %v3918_v37  ;;  %2051 = vmatprep.subr.mxu0 %v4008_v16  ;;  %v1623_v37 = vmax.f32 %v1610_v52, 1.0  ;;  %v4039_v16 = vld [vmem:[#allocation67_spill] sm:$0xff]  ;;  %v4040_v52 = vld [vmem:[#allocation70_spill] sm:$0xff] }
  0x99   :  { %918 = vmatprep.mubr.f32.mxu0 %v3060_v7  ;;  %1135 = vmatprep.mubr.f32.mxu1 %v4009_v10  ;;  %v4023_v7 = vand.u32 4294901760, %v3072_v45  ;;  %v4041_v10 = vld [vmem:[#allocation72_spill] sm:$0xff] }
  0x9a   :  { %2052 = vmatpush3.msra.mxu0 %v4010_v46  ;;  %2120 = vmatprep.subr.mxu1 %v3920_v35  ;;  %v4013_v35 = vand.u32 4294901760, %v2739_v27  ;;  %2178 = vrcp.f32 %v1623_v37  ;;  %v1613_v27 = vld [vmem:[%s3611_s2 + $0x38] sm:$0xff]  ;;  %v4045_v37 = vld [vmem:[#allocation80_spill] sm:$0xff] }
  0x9b   :  { %921 = vmatmul.mubr.f32.gmra.mxu0 %v3072_v45  ;;  %1139 = vmatmul.mubr.f32.gmra.mxu1 %v4011_v39  ;;  %2180 = vrcp.f32 %v1624_v26  ;;  %v1626_v21 = vmax.f32 %v1613_v27, 1.0  ;;  %v1629_v45 = vmax.f32 %v1616_v0, 1.0  ;;  %v4042_v46 = vld [vmem:[#allocation73_spill] sm:$0xff]  ;;  %v4044_v39 = vld [vmem:[#allocation78_spill] sm:$0xff] }
  0x9c   :  { %2053 = vmatprep.subr.mxu0 %v4012_v22  ;;  %2121 = vmatpush3.msra.mxu1 %v3921_v58  ;;  %v1625_v58 = vmax.f32 %v1612_v44, 1.0  ;;  %v4047_v22 = vld [vmem:[#allocation26_spill] sm:$0xff] }
  0x9d   :  { %2054 = vmatpush3.msra.mxu0 %v4013_v35  ;;  %1146 = vmatprep.mubr.f32.mxu1 %v4014_v47 }
  0x9e   :  { %2055 = vmatprep.subr.mxu0 %v4015_v13  ;;  %1327 = vmatprep.mubr.f32.mxu0 %v4016_v5  ;;  %2182 = vrcp.f32 %v1625_v58 }
  0x9f   :  { %2056 = vmatpush3.msra.mxu0 %v4017_v48  ;;  %2122 = vmatprep.subr.mxu1 %v3923_v51  ;;  %v4021_v51 = vld [vmem:[#allocation32_spill] sm:$0xff]  ;;  %2184 = vrcp.f32 %v1626_v21 }
  0xa0   :  { %1150 = vmatmul.mubr.f32.gmra.mxu1 %v4018_v57  ;;  %1329 = vmatmul.mubr.f32.vlgmr.msra.gmra.mxu0 %v4019_v33  ;;  %2186 = vrcp.f32 %v1627_v6 }
  0xa1   :  { %2123 = vmatpush3.msra.mxu1 %v2571_v43  ;;  %1157 = vmatprep.mubr.f32.mxu1 %v4020_v41  ;;  %v2171_v43 = vpop.eup %2170  ;;  %2188 = vrcp.f32 %v1628_v36 }
  0xa2   :  { %2124 = vmatprep.subr.mxu1 %v4021_v51  ;;  %1334 = vmatprep.mubr.f32.mxu0 %v4022_v30  ;;  %v2173_v28 = vpop.eup %2172  ;;  %2190 = vrcp.f32 %v1629_v45 }
  0xa3   :  { %2125 = vmatpush3.msra.mxu1 %v3926_v56  ;;  %2168 = vset.pattern.permute.xlu0 %v2196_v38  ;;  %v4026_v56 = vld [vmem:[#allocation45_spill] sm:$0xff]  ;;  %v2175_v4 = vpop.eup %2174  ;;  %2192 = vrcp.f32 %v1630_v53 }
  0xa4   :  { %1161 = vmatmul.mubr.f32.gmra.mxu1 %v4023_v7  ;;  %1336 = vmatmul.mubr.f32.gmra.mxu0 %v4024_v20  ;;  %v2177_v29 = vpop.eup %2176 }
  0xa5   :  { %2126 = vmatprep.subr.mxu1 %v4025_v55  ;;  %1341 = vmatprep.mubr.f32.mxu0 %v4026_v56 }
  0xa6   :  { %2127 = vmatpush3.msra.mxu1 %v3932_v12  ;;  %1515 = vmatprep.mubr.f32.mxu1 %v4016_v5  ;;  %v1618_v12 = vld [vmem:[%s3611_s2 + $0x60] sm:$0xff] }
  0xa7   :  { %1647 = vperm.xlu0 %2168, %v2171_v43   ;;  %2169 = vset.pattern.permute.xlu1 %v2196_v38  ;;  %v1631_v50 = vmax.f32 %v1618_v12, 1.0  ;;  %v2179_v49 = vpop.eup %2178 }
  0xa8   :  { %1343 = vmatmul.mubr.f32.gmra.mxu0 %v4027_v63  ;;  %1517 = vmatmul.mubr.f32.vlgmr.msra.gmra.mxu1 %v4019_v33  ;;  %v2181_v60 = vpop.eup %2180 }
  0xa9   :  { %1348 = vmatprep.mubr.f32.mxu0 %v4028_v31  ;;  %1522 = vmatprep.mubr.f32.mxu1 %v4022_v30  ;;  %2194 = vrcp.f32 %v1631_v50 }
  0xaa   :  { %1657 = vperm.xlu1 %2169, %v2173_v28  }
  0xab   :  { %1652 = vperm.xlu0 %2168, %v2175_v4   ;;  %v2183_v25 = vpop.eup %2182 }
  0xac   :  { %1350 = vmatmul.mubr.f32.gmra.mxu0 %v4029_v18  ;;  %1524 = vmatmul.mubr.f32.gmra.mxu1 %v4024_v20  ;;  %v2185_v40 = vpop.eup %2184 }
  0xad   :  { %1355 = vmatprep.mubr.f32.mxu0 %v4030_v8  ;;  %1529 = vmatprep.mubr.f32.mxu1 %v4026_v56  ;;  %v2187_v19 = vpop.eup %2186 }
  0xae   :  { %1662 = vperm.xlu1 %2169, %v2177_v29   ;;  %v2189_v1 = vpop.eup %2188 }
  0xaf   :  { %1667 = vperm.xlu0 %2168, %v2179_v49   ;;  %v2191_v42 = vpop.eup %2190 }
  0xb0   :  { %1357 = vmatmul.mubr.f32.gmra.mxu0 %v4031_v32  ;;  %1531 = vmatmul.mubr.f32.gmra.mxu1 %v4027_v63  ;;  %v2193_v54 = vpop.eup %2192 }
  0xb1   :  { %1362 = vmatprep.mubr.f32.mxu0 %v4032_v11  ;;  %1536 = vmatprep.mubr.f32.mxu1 %v4028_v31 }
  0xb2   :  { %1672 = vperm.xlu1 %2169, %v2181_v60  }
  0xb3   :  { %1677 = vperm.xlu0 %2168, %v2183_v25  }
  0xb4   :  { %1364 = vmatmul.mubr.f32.gmra.mxu0 %v4033_v34  ;;  %1538 = vmatmul.mubr.f32.gmra.mxu1 %v4029_v18 }
  0xb5   :  { %1369 = vmatprep.mubr.f32.mxu0 %v4034_v15  ;;  %1543 = vmatprep.mubr.f32.mxu1 %v4030_v8 }
  0xb6   :  { %1682 = vperm.xlu1 %2169, %v2185_v40   ;;  %v2195_v23 = vpop.eup %2194 }
  0xb7   :  { %1687 = vperm.xlu0 %2168, %v2187_v19  }
  0xb8   :  { %1371 = vmatmul.mubr.f32.gmra.mxu0 %v4035_v62  ;;  %1545 = vmatmul.mubr.f32.gmra.mxu1 %v4031_v32 }
  0xb9   :  { %1376 = vmatprep.mubr.f32.mxu0 %v4036_v2  ;;  %1550 = vmatprep.mubr.f32.mxu1 %v4032_v11 }
  0xba   :  { %1692 = vperm.xlu1 %2169, %v2189_v1  }
  0xbb   :  { %1697 = vperm.xlu0 %2168, %v2191_v42  }
  0xbc   :  { %1378 = vmatmul.mubr.f32.gmra.mxu0 %v4037_v61  ;;  %1552 = vmatmul.mubr.f32.gmra.mxu1 %v4033_v34 }
  0xbd   :  { %1383 = vmatprep.mubr.f32.mxu0 %v4038_v14  ;;  %1557 = vmatprep.mubr.f32.mxu1 %v4034_v15 }
  0xbe   :  { %1702 = vperm.xlu1 %2169, %v2193_v54  }
  0xbf   :  { %1707 = vperm.xlu0 %2168, %v2195_v23  }
  0xc0   :  { %1385 = vmatmul.mubr.f32.gmra.mxu0 %v4039_v16  ;;  %1559 = vmatmul.mubr.f32.gmra.mxu1 %v4035_v62 }
  0xc1   :  { %1390 = vmatprep.mubr.f32.mxu0 %v4040_v52  ;;  %1564 = vmatprep.mubr.f32.mxu1 %v4036_v2 }
  0xc4   :  { %1392 = vmatmul.mubr.f32.gmra.mxu0 %v4041_v10  ;;  %1566 = vmatmul.mubr.f32.gmra.mxu1 %v4037_v61 }
  0xc5   :  { %1397 = vmatprep.mubr.f32.mxu0 %v4042_v46  ;;  %1571 = vmatprep.mubr.f32.mxu1 %v4038_v14 }
  0xc8   :  { %1399 = vmatmul.mubr.f32.gmra.mxu0 %v4043_v3  ;;  %1573 = vmatmul.mubr.f32.gmra.mxu1 %v4039_v16 }
  0xc9   :  { %1404 = vmatprep.mubr.f32.mxu0 %v4044_v39  ;;  %1578 = vmatprep.mubr.f32.mxu1 %v4040_v52 }
  0xcc   :  { %1406 = vmatmul.mubr.f32.gmra.mxu0 %v4045_v37  ;;  %1580 = vmatmul.mubr.f32.gmra.mxu1 %v4041_v10 }
  0xcd   :  { %1411 = vmatprep.mubr.f32.mxu0 %v4046_v17  ;;  %1585 = vmatprep.mubr.f32.mxu1 %v4042_v46 }
  0xd0   :  { %1413 = vmatmul.mubr.f32.gmra.mxu0 %v4047_v22  ;;  %1587 = vmatmul.mubr.f32.gmra.mxu1 %v4043_v3 }
  0xd1   :  { %1592 = vmatprep.mubr.f32.mxu1 %v4044_v39 }
  0xd4   :  { %1594 = vmatmul.mubr.f32.gmra.mxu1 %v4045_v37 }
  0xd5   :  { %1599 = vmatprep.mubr.f32.mxu1 %v4046_v17 }
  0xd8   :  { %1601 = vmatmul.mubr.f32.gmra.mxu1 %v4047_v22 }
  0xec   :  { %v1773_v44 = vpop.f32.mrf.mxu0 }
  0xee   :  { %v1774_v35 = vpop.f32.mrf.mxu0 }
  0xef   :  { %v1775_v47 = vadd.f32 %v1774_v35, %v1773_v44 }
  0xf3   :  { %v1776_v13 = vpop.f32.mrf.mxu0 }
  0xf5   :  { %v1777_v5 = vpop.f32.mrf.mxu0  ;;  %v1844_v48 = vpop.f32.mrf.mxu1 }
  0xf6   :  { %v1778_v26 = vadd.f32 %v1777_v5, %v1776_v13 }
  0xf7   :  { %v1845_v58 = vpop.f32.mrf.mxu1 }
  0xf8   :  { %v1779_v27 = vpop.f32.mrf.mxu0  ;;  %v1846_v57 = vadd.f32 %v1845_v58, %v1844_v48 }
  0xfa   :  { %v1847_v33 = vpop.f32.mrf.mxu1  ;;  %v1780_v24 = vpop.f32.mrf.mxu0  ;;  %v3392_v41 = vadd.f32 %v1846_v57, %v1775_v47 }
  0xfb   :  { %v1781_v51 = vadd.f32 %v1780_v24, %v1779_v27 }
  0xfc   :  { %v1848_v30 = vpop.f32.mrf.mxu1  ;;  %v1782_v21 = vpop.f32.mrf.mxu0 }
  0xfd   :  { %v1849_v38 = vadd.f32 %v1848_v30, %v1847_v33 }
  0xfe   :  { %v1850_v6 = vpop.f32.mrf.mxu1  ;;  %v1783_v9 = vpop.f32.mrf.mxu0 }
  0xff   :  { %v3394_v43 = vadd.f32 %v1849_v38, %v1778_v26  ;;  %v1784_v7 = vadd.f32 %v1783_v9, %v1782_v21 }
 0x100   :  { %v1851_v20 = vpop.f32.mrf.mxu1 }
 0x101   :  { %v1785_v0 = vpop.f32.mrf.mxu0  ;;  %v1852_v55 = vadd.f32 %v1851_v20, %v1850_v6 }
 0x102   :  { %v1853_v56 = vpop.f32.mrf.mxu1 }
 0x103   :  { %v1786_v36 = vpop.f32.mrf.mxu0  ;;  %v3396_v28 = vadd.f32 %v1852_v55, %v1781_v51 }
 0x104   :  { %v1787_v45 = vadd.f32 %v1786_v36, %v1785_v0  ;;  %v1854_v59 = vpop.f32.mrf.mxu1 }
 0x105   :  { %v1788_v4 = vpop.f32.mrf.mxu0  ;;  %v1855_v63 = vadd.f32 %v1854_v59, %v1853_v56 }
 0x106   :  { %v1856_v12 = vpop.f32.mrf.mxu1 }
 0x107   :  { %v1789_v31 = vpop.f32.mrf.mxu0  ;;  %v3398_v53 = vadd.f32 %v1855_v63, %v1784_v7 }
 0x108   :  { %v1790_v29 = vadd.f32 %v1789_v31, %v1788_v4  ;;  %v1857_v50 = vpop.f32.mrf.mxu1 }
 0x109   :  { %v1791_v49 = vpop.f32.mrf.mxu0  ;;  %v1858_v18 = vadd.f32 %v1857_v50, %v1856_v12 }
 0x10a   :  { %v1859_v8 = vpop.f32.mrf.mxu1 }
 0x10b   :  { %v1792_v60 = vpop.f32.mrf.mxu0  ;;  %v3400_v25 = vadd.f32 %v1858_v18, %v1787_v45 }
 0x10c   :  { %v1793_v32 = vadd.f32 %v1792_v60, %v1791_v49  ;;  %v1860_v11 = vpop.f32.mrf.mxu1 }
 0x10d   :  { %v1794_v40 = vpop.f32.mrf.mxu0  ;;  %v1861_v19 = vadd.f32 %v1860_v11, %v1859_v8 }
 0x10e   :  { %v1862_v34 = vpop.f32.mrf.mxu1 }
 0x10f   :  { %v1795_v15 = vpop.f32.mrf.mxu0  ;;  %v3402_v1 = vadd.f32 %v1861_v19, %v1790_v29 }
 0x110   :  { %v1796_v42 = vadd.f32 %v1795_v15, %v1794_v40  ;;  %v1863_v62 = vpop.f32.mrf.mxu1 }
 0x111   :  { %v1797_v2 = vpop.f32.mrf.mxu0  ;;  %v1864_v54 = vadd.f32 %v1863_v62, %v1862_v34 }
 0x112   :  { %v1865_v23 = vpop.f32.mrf.mxu1 }
 0x113   :  { %v1798_v61 = vpop.f32.mrf.mxu0  ;;  %v3404_v14 = vadd.f32 %v1864_v54, %v1793_v32 }
 0x114   :  { %v1799_v16 = vadd.f32 %v1798_v61, %v1797_v2  ;;  %v1866_v52 = vpop.f32.mrf.mxu1 }
 0x115   :  { %v1800_v10 = vpop.f32.mrf.mxu0  ;;  %v1867_v46 = vadd.f32 %v1866_v52, %v1865_v23 }
 0x117   :  { %v1801_v3 = vpop.f32.mrf.mxu0  ;;  %v3406_v39 = vadd.f32 %v1867_v46, %v1796_v42  ;;  %v1868_v37 = vpop.f32.mrf.mxu1 }
 0x118   :  { %v1802_v17 = vadd.f32 %v1801_v3, %v1800_v10 }
 0x119   :  { %v1803_v22 = vpop.f32.mrf.mxu0  ;;  %v1869_v44 = vpop.f32.mrf.mxu1 }
 0x11a   :  { %v1870_v35 = vadd.f32 %v1869_v44, %v1868_v37 }
 0x11b   :  { %v1804_v47 = vpop.f32.mrf.mxu0  ;;  %v1871_v13 = vpop.f32.mrf.mxu1 }
 0x11c   :  { %v1805_v5 = vadd.f32 %v1804_v47, %v1803_v22  ;;  %v3408_v26 = vadd.f32 %v1870_v35, %v1799_v16 }
 0x11d   :  { %v1806_v48 = vpop.f32.mrf.mxu0  ;;  %v1872_v58 = vpop.f32.mrf.mxu1 }
 0x11e   :  { %4048 = vst [vmem:[#allocation12_spill] sm:$0xff] %v3408_v26  ;;  %v1873_v27 = vadd.f32 %v1872_v58, %v1871_v13 }
 0x11f   :  { %v1807_v57 = vpop.f32.mrf.mxu0 }
 0x120   :  { %v1808_v33 = vadd.f32 %v1807_v57, %v1806_v48  ;;  %v3410_v24 = vadd.f32 %v1873_v27, %v1802_v17 }
 0x121   :  { %v1809_v51 = vpop.f32.mrf.mxu0  ;;  %v1874_v30 = vpop.f32.mrf.mxu1 }
 0x122   :  { %4049 = vst [vmem:[#allocation28_spill] sm:$0xff] %v3410_v24 }
 0x123   :  { %v1810_v21 = vpop.f32.mrf.mxu0  ;;  %v1875_v38 = vpop.f32.mrf.mxu1 }
 0x124   :  { %v1811_v6 = vadd.f32 %v1810_v21, %v1809_v51  ;;  %v1876_v9 = vadd.f32 %v1875_v38, %v1874_v30 }
 0x126   :  { %v3412_v7 = vadd.f32 %v1876_v9, %v1805_v5  ;;  %v1877_v20 = vpop.f32.mrf.mxu1  ;;  %v1915_v0 = vpop.f32.mrf.mxu0 }
 0x128   :  { %4050 = vst [vmem:[#allocation14_spill] sm:$0xff] %v3412_v7  ;;  %v1878_v55 = vpop.f32.mrf.mxu1  ;;  %v1916_v56 = vpop.f32.mrf.mxu0 }
 0x129   :  { %v1879_v36 = vadd.f32 %v1878_v55, %v1877_v20 }
 0x12a   :  { %v1880_v45 = vpop.f32.mrf.mxu1  ;;  %v1918_v59 = vpop.f32.mrf.mxu0 }
 0x12b   :  { %v3414_v4 = vadd.f32 %v1879_v36, %v1808_v33 }
 0x12c   :  { %v1881_v63 = vpop.f32.mrf.mxu1  ;;  %v1919_v12 = vpop.f32.mrf.mxu0 }
 0x12d   :  { %4051 = vst [vmem:[#allocation30_spill] sm:$0xff] %v3414_v4  ;;  %v1882_v31 = vadd.f32 %v1881_v63, %v1880_v45  ;;  %v1917_v4 = vadd.f32 %v1916_v56, %v1915_v0 }
 0x12e   :  { %v3416_v29 = vpop.f32.mrf.mxu0  ;;  %v1986_v50 = vpop.f32.mrf.mxu1 }
 0x12f   :  { %v3418_v49 = vadd.f32 %v1882_v31, %v1811_v6 }
 0x130   :  { %v1922_v18 = vpop.f32.mrf.mxu0  ;;  %v1987_v8 = vpop.f32.mrf.mxu1 }
 0x131   :  { %4052 = vst [vmem:[#allocation18_spill] sm:$0xff] %v3418_v49 }
 0x132   :  { %v3420_v60 = vpop.f32.mrf.mxu0  ;;  %v1989_v32 = vpop.f32.mrf.mxu1 }
 0x134   :  { %v3422_v11 = vpop.f32.mrf.mxu0  ;;  %v1990_v40 = vpop.f32.mrf.mxu1 }
 0x136   :  { %v3424_v19 = vpop.f32.mrf.mxu0  ;;  %v3426_v34 = vpop.f32.mrf.mxu1 }
 0x138   :  { %v3428_v15 = vpop.f32.mrf.mxu0  ;;  %v1993_v42 = vpop.f32.mrf.mxu1 }
 0x13b   :  { %v3430_v62 = vpop.f32.mrf.mxu0  ;;  %v3432_v2 = vpop.f32.mrf.mxu1 }
 0x13d   :  { %v3434_v54 = vpop.f32.mrf.mxu0  ;;  %v3436_v23 = vpop.f32.mrf.mxu1 }
 0x13f   :  { %v3438_v61 = vpop.f32.mrf.mxu0  ;;  %v3440_v16 = vpop.f32.mrf.mxu1 }
 0x141   :  { %v3442_v52 = vpop.f32.mrf.mxu0  ;;  %v3444_v10 = vpop.f32.mrf.mxu1 }
 0x143   :  { %v3446_v46 = vpop.f32.mrf.mxu1 }
 0x144   :  { %v3448_v3 = vpop.f32.mrf.mxu0 }
 0x145   :  { %v3450_v37 = vpop.f32.mrf.mxu1 }
 0x146   :  { %v3452_v17 = vpop.f32.mrf.mxu0 }
 0x148   :  { %v3454_v22 = vpop.f32.mrf.mxu0  ;;  %v3456_v44 = vpop.f32.mrf.mxu1 }
 0x14a   :  { %v3458_v35 = vpop.f32.mrf.mxu0  ;;  %v3460_v47 = vpop.f32.mrf.mxu1 }
 0x14c   :  { %v3462_v13 = vpop.f32.mrf.mxu0 }
 0x14d   :  { %4053 = vst [vmem:[#allocation31_spill] sm:$0xff] %v3462_v13  ;;  %v3464_v5 = vpop.f32.mrf.mxu1 }
 0x14e   :  { %v3466_v48 = vpop.f32.mrf.mxu0 }
 0x14f   :  { %4054 = vst [vmem:[#allocation33_spill] sm:$0xff] %v3466_v48  ;;  %v3468_v58 = vpop.f32.mrf.mxu1 }
 0x151   :  { %v3470_v27 = vpop.f32.mrf.mxu0  ;;  %v3472_v57 = vpop.f32.mrf.mxu1 }
 0x152   :  { %4055 = vst [vmem:[#allocation20_spill] sm:$0xff] %v3470_v27  ;;  %v1920_v27 = vadd.f32 %v1919_v12, %v1918_v59  ;;  %v1926_v12 = vadd.f32 %v3422_v11, %v3420_v60  ;;  %v1658_v60 = vpop.permute.xlu1 %1657 }
 0x153   :  { %v3474_v33 = vpop.f32.mrf.mxu0  ;;  %v3476_v51 = vpop.f32.mrf.mxu1 }
 0x154   :  { %4056 = vst [vmem:[#allocation21_spill] sm:$0xff] %v3474_v33  ;;  %v1988_v33 = vadd.f32 %v1987_v8, %v1986_v50  ;;  %v824_v56 = vadd.f32 %v1920_v27, %v3394_v43  ;;  %v842_v11 = vadd.f32 %v1926_v12, %v3398_v53 }
 0x155   :  { %v3478_v30 = vpop.f32.mrf.mxu1 }
 0x156   :  { %4057 = vst [vmem:[#allocation22_spill] sm:$0xff] %v3478_v30  ;;  %v3480_v21 = vpop.f32.mrf.mxu0  ;;  %v1648_v30 = vpop.permute.xlu0 %1647 }
 0x157   :  { %4058 = vst [vmem:[#allocation23_spill] sm:$0xff] %v3480_v21  ;;  %v3482_v38 = vpop.f32.mrf.mxu1 }
 0x158   :  { %4059 = vst [vmem:[#allocation24_spill] sm:$0xff] %v3482_v38  ;;  %v3484_v6 = vpop.f32.mrf.mxu0 }
 0x159   :  { %4060 = vst [vmem:[#allocation40_spill] sm:$0xff] %v3484_v6 }
 0x15b   :  { %v3486_v9 = vpop.f32.mrf.mxu0  ;;  %v3488_v20 = vpop.f32.mrf.mxu1 }
 0x15c   :  { %4061 = vst [vmem:[#allocation25_spill] sm:$0xff] %v3486_v9  ;;  %4062 = vst [vmem:[#allocation27_spill] sm:$0xff] %v3488_v20  ;;  %v815_v20 = vadd.f32 %v1917_v4, %v3392_v41  ;;  %v1994_v41 = vadd.f32 %v1993_v42, %v3426_v34  ;;  %v1997_v34 = vadd.f32 %v3436_v23, %v3432_v2 }
 0x15d   :  { %v3490_v55 = vpop.f32.mrf.mxu0  ;;  %v3492_v36 = vpop.f32.mrf.mxu1 }
 0x15e   :  { %4063 = vst [vmem:[#allocation38_spill] sm:$0xff] %v3490_v55  ;;  %4064 = vst [vmem:[#allocation29_spill] sm:$0xff] %v3492_v36  ;;  %v1031_v38 = vadd.f32 %v1988_v33, %v815_v20  ;;  %v1064_v23 = vadd.f32 %v1997_v34, %v842_v11  ;;  %v2000_v20 = vadd.f32 %v3444_v10, %v3440_v16 }
 0x160   :  { %v3494_v45 = vpop.f32.mrf.mxu1  ;;  %v2057_v63 = vpop.f32.mrf.mxu0 }
 0x161   :  { %4065 = vst [vmem:[#allocation42_spill] sm:$0xff] %v3494_v45  ;;  %v1991_v45 = vadd.f32 %v1990_v40, %v1989_v32 }
 0x162   :  { %v3496_v31 = vpop.f32.mrf.mxu1  ;;  %v2058_v49 = vpop.f32.mrf.mxu0 }
 0x163   :  { %4066 = vst [vmem:[#allocation34_spill] sm:$0xff] %v3496_v31  ;;  %v2059_v55 = vadd.f32 %v2058_v49, %v2057_v63  ;;  %v1923_v31 = vadd.f32 %v1922_v18, %v3416_v29  ;;  %v1042_v26 = vadd.f32 %v1991_v45, %v824_v56 }
 0x164   :  { %v3498_v21 = vpop.f32.mrf.mxu1  ;;  %v2060_v7 = vpop.f32.mrf.mxu0 }
 0x165   :  { %4067 = vst [vmem:[#allocation3_spill] sm:$0xff] %v3498_v21  ;;  %v1331_v21 = vadd.f32 %v2059_v55, %v1031_v38  ;;  %v833_v4 = vadd.f32 %v1923_v31, %v3396_v28 }
 0x166   :  { %v3500_v6 = vpop.f32.mrf.mxu1  ;;  %v2061_v9 = vpop.f32.mrf.mxu0 }
 0x167   :  { %4068 = vst [vmem:[#allocation44_spill] sm:$0xff] %v3500_v6  ;;  %v2062_v50 = vadd.f32 %v2061_v9, %v2060_v7  ;;  %v1653_v7 = vpop.permute.xlu0 %1652  ;;  %v1053_v38 = vadd.f32 %v1994_v41, %v833_v4 }
 0x168   :  { %v2063_v24 = vpop.f32.mrf.mxu0  ;;  %v2128_v36 = vpop.f32.mrf.mxu1 }
 0x169   :  { %v1338_v18 = vadd.f32 %v2062_v50, %v1042_v26  ;;  %v1929_v26 = vadd.f32 %v3428_v15, %v3424_v19  ;;  %v1932_v15 = vadd.f32 %v3434_v54, %v3430_v62  ;;  %v2003_v50 = vadd.f32 %v3450_v37, %v3446_v46 }
 0x16a   :  { %v2064_v48 = vpop.f32.mrf.mxu0  ;;  %v2129_v0 = vpop.f32.mrf.mxu1  ;;  %v1935_v54 = vadd.f32 %v3442_v52, %v3438_v61  ;;  %v2006_v37 = vadd.f32 %v3460_v47, %v3456_v44  ;;  %v1938_v52 = vadd.f32 %v3452_v17, %v3448_v3  ;;  %v1941_v17 = vadd.f32 %v3458_v35, %v3454_v22  ;;  %v4069_v22 = vld [vmem:[#allocation12_spill] sm:$0xff] }
 0x16b   :  { %v2130_v8 = vadd.f32 %v2129_v0, %v2128_v36  ;;  %v2065_v32 = vadd.f32 %v2064_v48, %v2063_v24  ;;  %v851_v19 = vadd.f32 %v1929_v26, %v3400_v25  ;;  %v1663_v0 = vpop.permute.xlu1 %1662  ;;  %v860_v62 = vadd.f32 %v1932_v15, %v3402_v1 }
 0x16c   :  { %v2066_v6 = vpop.f32.mrf.mxu0  ;;  %v2131_v13 = vpop.f32.mrf.mxu1  ;;  %v869_v61 = vadd.f32 %v1935_v54, %v3404_v14  ;;  %v878_v3 = vadd.f32 %v1938_v52, %v3406_v39  ;;  %v887_v35 = vadd.f32 %v1941_v17, %v4069_v22 }
 0x16d   :  { %v1519_v59 = vadd.f32 %v2130_v8, %v1331_v21  ;;  %v1075_v10 = vadd.f32 %v2000_v20, %v851_v19  ;;  %v1086_v46 = vadd.f32 %v2003_v50, %v860_v62  ;;  %v4076_v62 = vld [vmem:[#allocation21_spill] sm:$0xff] }
 0x16e   :  { %v2067_v29 = vpop.f32.mrf.mxu0  ;;  %v2132_v49 = vpop.f32.mrf.mxu1  ;;  %v1097_v47 = vadd.f32 %v2006_v37, %v869_v61  ;;  %v4077_v37 = vld [vmem:[#allocation27_spill] sm:$0xff] }
 0x16f   :  { %v1710_v43 = vmul.f32 %v1648_v30, %v1519_v59  ;;  %v2133_v40 = vadd.f32 %v2132_v49, %v2131_v13  ;;  %v1345_v13 = vadd.f32 %v2065_v32, %v1053_v38  ;;  %v2068_v48 = vadd.f32 %v2067_v29, %v2066_v6  ;;  %v1668_v32 = vpop.permute.xlu0 %1667  ;;  %v1673_v14 = vpop.permute.xlu1 %1672 }
 0x170   :  { %v2069_v27 = vpop.f32.mrf.mxu0  ;;  %v2134_v33 = vpop.f32.mrf.mxu1 }
 0x171   :  { %1724 = vst.msk [vmem:[%s3612_s3] sm:$0xff] %vm1723_vm0, %v1710_v43  ;;  %v1526_v28 = vadd.f32 %v2133_v40, %v1338_v18  ;;  %v1352_v36 = vadd.f32 %v2068_v48, %v1064_v23  ;;  %v4071_v23 = vld [vmem:[#allocation33_spill] sm:$0xff] }
 0x172   :  { %v2070_v24 = vpop.f32.mrf.mxu0  ;;  %v2135_v42 = vpop.f32.mrf.mxu1 }
 0x173   :  { %v1711_v30 = vmul.f32 %v1653_v7, %v1526_v28  ;;  %v2136_v21 = vadd.f32 %v2135_v42, %v2134_v33  ;;  %v2071_v45 = vadd.f32 %v2070_v24, %v2069_v27  ;;  %v2009_v28 = vadd.f32 %v3468_v58, %v3464_v5 }
 0x174   :  { %v2072_v9 = vpop.f32.mrf.mxu0  ;;  %v2137_v2 = vpop.f32.mrf.mxu1 }
 0x175   :  { %1725 = vst.msk [vmem:[%s3612_s3 + $0x8] sm:$0xff] %vm1723_vm0, %v1711_v30  ;;  %v1533_v53 = vadd.f32 %v2136_v21, %v1345_v13  ;;  %v1359_v59 = vadd.f32 %v2071_v45, %v1075_v10  ;;  %v1108_v58 = vadd.f32 %v2009_v28, %v878_v3  ;;  %v2012_v21 = vadd.f32 %v3476_v51, %v3472_v57  ;;  %v4074_v10 = vld [vmem:[#allocation28_spill] sm:$0xff] }
 0x176   :  { %v2073_v6 = vpop.f32.mrf.mxu0  ;;  %v2138_v55 = vpop.f32.mrf.mxu1 }
 0x177   :  { %v1712_v63 = vmul.f32 %v1658_v60, %v1533_v53  ;;  %v2139_v31 = vadd.f32 %v2138_v55, %v2137_v2  ;;  %v2074_v4 = vadd.f32 %v2073_v6, %v2072_v9  ;;  %v1678_v9 = vpop.permute.xlu0 %1677  ;;  %v4070_v2 = vld [vmem:[#allocation31_spill] sm:$0xff]  ;;  %v1119_v51 = vadd.f32 %v2012_v21, %v887_v35 }
 0x178   :  { %v2075_v56 = vpop.f32.mrf.mxu0  ;;  %v2140_v16 = vpop.f32.mrf.mxu1  ;;  %v1944_v20 = vadd.f32 %v4071_v23, %v4070_v2 }
 0x179   :  { %1726 = vst.msk [vmem:[%s3612_s3 + $0x10] sm:$0xff] %vm1723_vm0, %v1712_v63  ;;  %v1540_v25 = vadd.f32 %v2139_v31, %v1352_v36  ;;  %v1366_v7 = vadd.f32 %v2074_v4, %v1086_v46  ;;  %v4072_v63 = vld [vmem:[#allocation22_spill] sm:$0xff]  ;;  %v4073_v31 = vld [vmem:[#allocation24_spill] sm:$0xff] }
 0x17a   :  { %v2076_v8 = vpop.f32.mrf.mxu0  ;;  %v2141_v41 = vpop.f32.mrf.mxu1  ;;  %v896_v50 = vadd.f32 %v1944_v20, %v4074_v10 }
 0x17b   :  { %v1713_v12 = vmul.f32 %v1663_v0, %v1540_v25  ;;  %v2142_v29 = vadd.f32 %v2141_v41, %v2140_v16  ;;  %v2077_v27 = vadd.f32 %v2076_v8, %v2075_v56  ;;  %v2015_v0 = vadd.f32 %v4073_v31, %v4072_v63  ;;  %v1683_v56 = vpop.permute.xlu1 %1682  ;;  %v4075_v25 = vld [vmem:[#allocation20_spill] sm:$0xff]  ;;  %v1688_v61 = vpop.permute.xlu0 %1687 }
 0x17c   :  { %v2078_v49 = vpop.f32.mrf.mxu0  ;;  %v2143_v18 = vpop.f32.mrf.mxu1  ;;  %v1947_v54 = vadd.f32 %v4076_v62, %v4075_v25 }
 0x17d   :  { %1727 = vst.msk [vmem:[%s3612_s3 + $0x18] sm:$0xff] %vm1723_vm0, %v1713_v12  ;;  %v1547_v1 = vadd.f32 %v2142_v29, %v1359_v59  ;;  %v1373_v24 = vadd.f32 %v2077_v27, %v1097_v47  ;;  %v1130_v46 = vadd.f32 %v2015_v0, %v896_v50  ;;  %v4081_v27 = vld [vmem:[#allocation40_spill] sm:$0xff] }
 0x17e   :  { %v2079_v43 = vpop.f32.mrf.mxu0  ;;  %v2144_v40 = vpop.f32.mrf.mxu1 }
 0x17f   :  { %v1714_v33 = vmul.f32 %v1668_v32, %v1547_v1  ;;  %v2145_v38 = vadd.f32 %v2144_v40, %v2143_v18  ;;  %v2080_v42 = vadd.f32 %v2079_v43, %v2078_v49  ;;  %v4078_v32 = vld [vmem:[#allocation29_spill] sm:$0xff]  ;;  %v4079_v43 = vld [vmem:[#allocation14_spill] sm:$0xff]  ;;  %v1693_v21 = vpop.permute.xlu1 %1692 }
 0x180   :  { %v2081_v34 = vpop.f32.mrf.mxu0  ;;  %v2146_v44 = vpop.f32.mrf.mxu1  ;;  %v2018_v1 = vadd.f32 %v4078_v32, %v4077_v37  ;;  %v905_v40 = vadd.f32 %v1947_v54, %v4079_v43 }
 0x181   :  { %1728 = vst.msk [vmem:[%s3612_s3 + $0x20] sm:$0xff] %vm1723_vm0, %v1714_v33  ;;  %v1554_v60 = vadd.f32 %v2145_v38, %v1366_v7  ;;  %v1380_v15 = vadd.f32 %v2080_v42, %v1108_v58  ;;  %v4080_v7 = vld [vmem:[#allocation23_spill] sm:$0xff] }
 0x182   :  { %v2082_v11 = vpop.f32.mrf.mxu0  ;;  %v2147_v26 = vpop.f32.mrf.mxu1  ;;  %v1950_v33 = vadd.f32 %v4081_v27, %v4080_v7  ;;  %v1141_v17 = vadd.f32 %v2018_v1, %v905_v40 }
 0x183   :  { %v1715_v13 = vmul.f32 %v1673_v14, %v1554_v60  ;;  %v2148_v48 = vadd.f32 %v2147_v26, %v2146_v44  ;;  %v2083_v6 = vadd.f32 %v2082_v11, %v2081_v34  ;;  %v4082_v11 = vld [vmem:[#allocation42_spill] sm:$0xff]  ;;  %v1703_v25 = vpop.permute.xlu1 %1702 }
 0x184   :  { %v2084_v30 = vpop.f32.mrf.mxu0  ;;  %v2149_v5 = vpop.f32.mrf.mxu1  ;;  %v4083_v26 = vld [vmem:[#allocation34_spill] sm:$0xff] }
 0x185   :  { %1729 = vst.msk [vmem:[%s3612_s3 + $0x28] sm:$0xff] %vm1723_vm0, %v1715_v13  ;;  %v1561_v39 = vadd.f32 %v2148_v48, %v1373_v24  ;;  %v1387_v59 = vadd.f32 %v2083_v6, %v1119_v51  ;;  %v2021_v24 = vadd.f32 %v4083_v26, %v4082_v11  ;;  %v4084_v13 = vld [vmem:[#allocation30_spill] sm:$0xff] }
 0x186   :  { %v2085_v53 = vpop.f32.mrf.mxu0  ;;  %v2150_v19 = vpop.f32.mrf.mxu1  ;;  %v914_v48 = vadd.f32 %v1950_v33, %v4084_v13 }
 0x187   :  { %v1716_v55 = vmul.f32 %v1678_v9, %v1561_v39  ;;  %v2151_v36 = vadd.f32 %v2150_v19, %v2149_v5  ;;  %v2086_v4 = vadd.f32 %v2085_v53, %v2084_v30  ;;  %v4085_v30 = vld [vmem:[#allocation25_spill] sm:$0xff]  ;;  %v4086_v5 = vld [vmem:[#allocation38_spill] sm:$0xff]  ;;  %v4087_v19 = vld [vmem:[#allocation3_spill] sm:$0xff] }
 0x188   :  { %v2087_v45 = vpop.f32.mrf.mxu0  ;;  %v2152_v57 = vpop.f32.mrf.mxu1  ;;  %v1953_v58 = vadd.f32 %v4086_v5, %v4085_v30  ;;  %v1152_v53 = vadd.f32 %v2021_v24, %v914_v48 }
 0x189   :  { %1730 = vst.msk [vmem:[%s3612_s3 + $0x30] sm:$0xff] %vm1723_vm0, %v1716_v55  ;;  %v1568_v16 = vadd.f32 %v2151_v36, %v1380_v15  ;;  %v1394_v44 = vadd.f32 %v2086_v4, %v1130_v46  ;;  %v4088_v15 = vld [vmem:[#allocation44_spill] sm:$0xff]  ;;  %v4089_v36 = vld [vmem:[#allocation18_spill] sm:$0xff] }
 0x18a   :  { %v2088_v8 = vpop.f32.mrf.mxu0  ;;  %v2153_v41 = vpop.f32.mrf.mxu1  ;;  %v2024_v6 = vadd.f32 %v4088_v15, %v4087_v19 }
 0x18b   :  { %v1717_v12 = vmul.f32 %v1683_v56, %v1568_v16  ;;  %v2154_v29 = vadd.f32 %v2153_v41, %v2152_v57  ;;  %v2089_v47 = vadd.f32 %v2088_v8, %v2087_v45  ;;  %v923_v45 = vadd.f32 %v1953_v58, %v4089_v36  ;;  %v1698_v57 = vpop.permute.xlu0 %1697 }
 0x18c   :  { %v2090_v49 = vpop.f32.mrf.mxu0  ;;  %v2155_v18 = vpop.f32.mrf.mxu1 }
 0x18d   :  { %1731 = vst.msk [vmem:[%s3612_s3 + $0x38] sm:$0xff] %vm1723_vm0, %v1717_v12  ;;  %v1575_v52 = vadd.f32 %v2154_v29, %v1387_v59  ;;  %v1401_v39 = vadd.f32 %v2089_v47, %v1141_v17  ;;  %v1163_v10 = vadd.f32 %v2024_v6, %v923_v45 }
 0x18e   :  { %v2091_v38 = vpop.f32.mrf.mxu0  ;;  %v2156_v34 = vpop.f32.mrf.mxu1 }
 0x18f   :  { %v1718_v28 = vmul.f32 %v1688_v61, %v1575_v52  ;;  %v2157_v14 = vadd.f32 %v2156_v34, %v2155_v18  ;;  %v2092_v22 = vadd.f32 %v2091_v38, %v2090_v49  ;;  %v1708_v4 = vpop.permute.xlu0 %1707 }
 0x190   :  { %v2093_v60 = vpop.f32.mrf.mxu0  ;;  %v2158_v3 = vpop.f32.mrf.mxu1 }
 0x191   :  { %1732 = vst.msk [vmem:[%s3612_s3 + $0x40] sm:$0xff] %vm1723_vm0, %v1718_v28  ;;  %v1582_v42 = vadd.f32 %v2157_v14, %v1394_v44  ;;  %v1408_v63 = vadd.f32 %v2092_v22, %v1152_v53 }
 0x192   :  { %v2159_v9 = vpop.f32.mrf.mxu1  ;;  %v2094_v23 = vpop.f32.mrf.mxu0 }
 0x193   :  { %v1719_v35 = vmul.f32 %v1693_v21, %v1582_v42  ;;  %v2160_v2 = vadd.f32 %v2159_v9, %v2158_v3  ;;  %v2095_v31 = vadd.f32 %v2094_v23, %v2093_v60 }
 0x194   :  { %v2161_v20 = vpop.f32.mrf.mxu1 }
 0x195   :  { %1733 = vst.msk [vmem:[%s3612_s3 + $0x48] sm:$0xff] %vm1723_vm0, %v1719_v35  ;;  %v1589_v55 = vadd.f32 %v2160_v2, %v1401_v39  ;;  %v1415_v54 = vadd.f32 %v2095_v31, %v1163_v10 }
 0x196   :  { %v2162_v51 = vpop.f32.mrf.mxu1 }
 0x197   :  { %v1720_v0 = vmul.f32 %v1698_v57, %v1589_v55  ;;  %v2163_v56 = vadd.f32 %v2162_v51, %v2161_v20 }
 0x198   :  { %v2164_v16 = vpop.f32.mrf.mxu1 }
 0x199   :  { %1734 = vst.msk [vmem:[%s3612_s3 + $0x50] sm:$0xff] %vm1723_vm0, %v1720_v0  ;;  %v1596_v50 = vadd.f32 %v2163_v56, %v1408_v63 }
 0x19a   :  { %v2165_v62 = vpop.f32.mrf.mxu1 }
 0x19b   :  { %v1721_v8 = vmul.f32 %v1703_v25, %v1596_v50  ;;  %v2166_v41 = vadd.f32 %v2165_v62, %v2164_v16 }
 0x19d   :  { %1735 = vst.msk [vmem:[%s3612_s3 + $0x58] sm:$0xff] %vm1723_vm0, %v1721_v8  ;;  %v1603_v59 = vadd.f32 %v2166_v41, %v1415_v54 }
 0x19f   :  { %v1722_v12 = vmul.f32 %v1708_v4, %v1603_v59 }
 0x1a1   :  { %1736 = vst.msk [vmem:[%s3612_s3 + $0x60] sm:$0xff] %vm1723_vm0, %v1722_v12 }

</bundles_post_ra>
